<compile_context>
chip_gen: v5e
topology: v5e:2x2
jax: 0.10.0
libtpu: 0.0.40
codegen_flags: <defaults>
</compile_context>

<pallas_src>
import math

import jax
import jax.numpy as jnp
from jax import lax
from jax.experimental import pallas as pl
from jax.experimental.pallas import tpu as pltpu  # noqa: F401  (TPU-specific tuning hooks)

# ---- model dims (small, consistent with a tiny encoder) ----
B, S, H, NH, FF, L, V = 2, 8, 32, 4, 64, 2, 64
DH = H // NH
BS = B * S
EPS = 1e-12
PACK_LANES = 128   # packed per-layer vectors: one vector per sublane row, lane-padded to 128


def _layer_norm(x, gamma, beta):
    mu = jnp.mean(x, axis=-1, keepdims=True)
    var = jnp.mean(jnp.square(x - mu), axis=-1, keepdims=True)
    return (x - mu) * lax.rsqrt(var + EPS) * gamma + beta


# -------------------- fused Pallas kernel --------------------

def fused_encoder_kernel(ids_ref, wemb_ref, pemb_ref, embln_ref, bias_ref, pool_ref,
                         wqkv_ref, wo_ref, w1_ref, w2_ref, vecs_ref,
                         hid_ref, pooled_ref):
    """Embeddings + all L post-LN encoder layers + masked mean pooling, one launch.

    ids_ref   : (B*S, 1)     int32 token ids (batch folded into rows)
    wemb_ref  : (V, H)       word embedding table (f32)
    pemb_ref  : (S, H)       position embedding table (f32)
    embln_ref : (2, H)       embedding LayerNorm [gamma; beta]
    bias_ref  : (B*S, B*S)   block-diagonal additive attention bias (0 keep / -1e9 mask)
    pool_ref  : (B, B*S)     block-diagonal, mask-normalized pooling matrix
    wqkv_ref  : (L, H, 3H)   fused Q|K|V projection weights, bf16, scale folded into Q
    wo_ref    : (L, H, H)    attention output projection, bf16
    w1_ref    : (L, H, FF)   FFN up, bf16
    w2_ref    : (L, FF, H)   FFN down, bf16
    vecs_ref  : (L, 8, 128)  packed biases + LN params, one vector per sublane row (f32)
    hid_ref   : (L+1, B*S, H) hidden states (embeddings + per-layer outputs)
    pooled_ref: (B, H)       masked-mean pooled output
    """
    # ---- embeddings: one-hot gather on the MXU + positional add + LayerNorm ----
    ids = ids_ref[...]                                                     # (BS, 1) int32
    onehot = (ids == lax.broadcasted_iota(jnp.int32, (BS, V), 1)).astype(jnp.float32)
    x = jnp.dot(onehot, wemb_ref[...], preferred_element_type=jnp.float32)  # (BS, H)
    pos = pemb_ref[...]                                                    # (S, H)
    x = x + jnp.concatenate([pos] * B, axis=0)                             # (BS, H)
    embln = embln_ref[...]
    cur = _layer_norm(x, embln[0:1, :], embln[1:2, :])                     # (BS, H) f32
    hid_ref[0] = cur

    bias = bias_ref[...]                                                   # (BS, BS) f32

    for l in range(L):                      # static unroll: L == 2
        vl = vecs_ref[l]                    # (8, 128) f32, all slices start at lane 0
        bqkv = vl[0:1, :3 * H]              # bq|bk|bv (scale already folded into bq)
        bo = vl[1:2, :H]
        g1 = vl[2:3, :H]
        be1 = vl[3:4, :H]
        b1 = vl[4:5, :FF]
        b2 = vl[5:6, :H]
        g2 = vl[6:7, :H]
        be2 = vl[7:8, :H]

        # --- fused QKV projection over the whole (B*S) row block (bf16 MXU, f32 acc) ---
        qkv = jnp.dot(cur.astype(jnp.bfloat16), wqkv_ref[l],
                      preferred_element_type=jnp.float32) + bqkv           # (BS, 3H) f32
        qkv16 = qkv.astype(jnp.bfloat16)

        # --- multi-head self-attention, whole batch at once via block-diagonal bias ---
        ctx_heads = []
        for hh in range(NH):                # static: NH == 4
            qh = qkv16[:, hh * DH:(hh + 1) * DH]                           # (BS, DH)
            kh = qkv16[:, H + hh * DH:H + (hh + 1) * DH]                   # (BS, DH)
            vh = qkv16[:, 2 * H + hh * DH:2 * H + (hh + 1) * DH]           # (BS, DH)
            # q @ k^T without an explicit transpose (contract last dims of both)
            sh = lax.dot_general(qh, kh, (((1,), (1,)), ((), ())),
                                 preferred_element_type=jnp.float32) + bias  # (BS, BS)
            sh = sh - jnp.max(sh, axis=-1, keepdims=True)
            ph = jnp.exp(sh)
            ph = ph / jnp.sum(ph, axis=-1, keepdims=True)                  # exact softmax
            ctx_heads.append(jnp.dot(ph.astype(jnp.bfloat16), vh,
                                     preferred_element_type=jnp.float32))  # (BS, DH)
        ctx = jnp.concatenate(ctx_heads, axis=1)                           # lane concat (BS, H)
        attn = jnp.dot(ctx.astype(jnp.bfloat16), wo_ref[l],
                       preferred_element_type=jnp.float32) + bo            # single Wo matmul

        h1 = _layer_norm(cur + attn, g1, be1)

        # --- feed-forward ---
        f = jnp.dot(h1.astype(jnp.bfloat16), w1_ref[l],
                    preferred_element_type=jnp.float32) + b1
        # TODO(synk): HF BERT-style encoders default to exact erf GELU; tanh approx used here.
        f = jax.nn.gelu(f, approximate=True)
        f = jnp.dot(f.astype(jnp.bfloat16), w2_ref[l],
                    preferred_element_type=jnp.float32) + b2

        cur = _layer_norm(h1 + f, g2, be2)
        hid_ref[1 + l] = cur

    # --- masked mean pooling: single matmul vs. pre-normalized block-diagonal matrix ---
    pooled_ref[...] = jnp.dot(pool_ref[...], cur, preferred_element_type=jnp.float32)


# -------------------- wrappers --------------------

def _pad_row(v):
    return jnp.pad(v, ((0, 0), (0, PACK_LANES - v.shape[1])))


def _pack_params(params):
    """Stack per-layer weights (bf16); pack small vectors one-per-sublane-row (f32)."""
    scale = 1.0 / math.sqrt(DH)
    wqkv, wo, w1, w2, vecs = [], [], [], [], []
    for (Wq, bq, Wk, bk, Wv, bv, Wo, bo, g1, be1, W1, b1, W2, b2, g2, be2) in params["layers"]:
        # fold 1/sqrt(DH) into the Q projection (and its bias)
        wqkv.append(jnp.concatenate([Wq * scale, Wk, Wv], axis=1).astype(jnp.bfloat16))
        wo.append(Wo.astype(jnp.bfloat16))
        w1.append(W1.astype(jnp.bfloat16))
        w2.append(W2.astype(jnp.bfloat16))
        rows = [jnp.concatenate([bq * scale, bk, bv], axis=1),  # row 0: bqkv (96 lanes)
                bo, g1, be1, b1, b2, g2, be2]                    # rows 1..7
        vecs.append(jnp.concatenate([_pad_row(r) for r in rows], axis=0))   # (8, 128)
    return (jnp.stack(wqkv), jnp.stack(wo), jnp.stack(w1), jnp.stack(w2), jnp.stack(vecs))


def run_fused_encoder(input_ids, attention_mask, params):
    wqkv, wo, w1, w2, vecs = _pack_params(params)

    ids = input_ids.reshape(BS, 1).astype(jnp.int32)
    emb_ln = jnp.concatenate([params["emb_gamma"], params["emb_beta"]], axis=0)   # (2, H)

    maskf = attention_mask.astype(jnp.float32)                                    # (B, S)
    key_bias = (maskf - 1.0) * 1e9                                                # 0 / -1e9
    same = jnp.eye(B, dtype=jnp.float32)
    # block-diagonal (BS, BS) additive bias: key padding inside blocks, -1e9 cross-batch
    bias_bk = jnp.where(same[:, :, None] > 0.0, key_bias[None, :, :], -1e9)       # (Bq,Bk,S)
    bias_mat = jnp.broadcast_to(bias_bk[:, None, :, :], (B, S, B, S)).reshape(BS, BS)

    denom = jnp.maximum(jnp.sum(maskf, axis=-1, keepdims=True), 1e-9)
    pool_mat = (jnp.eye(B, dtype=jnp.float32)[:, :, None]
                * (maskf / denom)[None, :, :]).reshape(B, BS)                     # (B, B*S)

    # Whole model (~50 KiB bf16 weights + a few KiB activations) is VMEM-resident; one launch,
    # no grid, no inter-layer HBM traffic. No BlockSpec tiling / vmem_limit needed.
    hid_all, pooled = pl.pallas_call(
        fused_encoder_kernel,
        out_shape=(
            jax.ShapeDtypeStruct((L + 1, BS, H), jnp.float32),
            jax.ShapeDtypeStruct((B, H), jnp.float32),
        ),
    )(ids, params["word_emb"], params["pos_emb"], emb_ln, bias_mat, pool_mat,
      wqkv, wo, w1, w2, vecs)

    return hid_all.reshape(L + 1, B, S, H), pooled


# -------------------- deterministic parameter init --------------------

def init_params(key):
    def dense(k, shape):
        return jax.random.normal(k, shape, jnp.float32) * 0.02

    keys = jax.random.split(key, 4 + L * 8)
    params = {
        "word_emb": dense(keys[0], (V, H)),
        "pos_emb": dense(keys[1], (S, H)),
        "emb_gamma": jnp.ones((1, H), jnp.float32),
        "emb_beta": jnp.zeros((1, H), jnp.float32),
        "layers": [],
    }
    ki = 4
    for _ in range(L):
        lk = keys[ki:ki + 8]
        ki += 8
        layer = (
            dense(lk[0], (H, H)), jnp.zeros((1, H), jnp.float32),    # Wq, bq
            dense(lk[1], (H, H)), jnp.zeros((1, H), jnp.float32),    # Wk, bk
            dense(lk[2], (H, H)), jnp.zeros((1, H), jnp.float32),    # Wv, bv
            dense(lk[3], (H, H)), jnp.zeros((1, H), jnp.float32),    # Wo, bo
            jnp.ones((1, H), jnp.float32), jnp.zeros((1, H), jnp.float32),   # LN1
            dense(lk[4], (H, FF)), jnp.zeros((1, FF), jnp.float32),  # W1, b1
            dense(lk[5], (FF, H)), jnp.zeros((1, H), jnp.float32),   # W2, b2
            jnp.ones((1, H), jnp.float32), jnp.zeros((1, H), jnp.float32),   # LN2
        )
        params["layers"].append(layer)
    return params


def custom_encoder_forward(params, input_ids, attention_mask):
    """Mirrors CustomEncoder.forward with cfg.pool == 'mean' (dropout off)."""
    hid_all, pooled = run_fused_encoder(input_ids, attention_mask, params)

    hidden_states = tuple(hid_all[i] for i in range(L + 1))   # embeddings + L layer outputs
    last_hidden_state = hid_all[L]

    # BaseModelOutputWithPooling analogue
    return {
        "pooler_output": pooled,                   # (B, H)
        "last_hidden_state": last_hidden_state,    # (B, S, H)
        "hidden_states": hidden_states,            # (L+1) x (B, S, H)
        "attentions": None,                        # TODO(synk): output_attentions not materialized
    }


if __name__ == "__main__":
    root = jax.random.PRNGKey(0)
    k_param, k_ids = jax.random.split(root)

    params = init_params(k_param)
    input_ids = jax.random.randint(k_ids, (B, S), 0, V, dtype=jnp.int32)
    # deterministic padding mask: row 0 fully valid, row 1 has 2 pad tokens
    attention_mask = jnp.array(
        [[1, 1, 1, 1, 1, 1, 1, 1],
         [1, 1, 1, 1, 1, 1, 0, 0]], dtype=jnp.int32)

    fwd = jax.jit(custom_encoder_forward)
    out = fwd(params, input_ids, attention_mask)
    jax.block_until_ready(out["pooler_output"])
    jax.block_until_ready(out["last_hidden_state"])

    assert out["pooler_output"].shape == (B, H)
    assert out["last_hidden_state"].shape == (B, S, H)
    assert len(out["hidden_states"]) == L + 1
    print("KERNEL_OK")
</pallas_src>

<mosaic_0001>
module attributes {stable_mosaic.version = 11 : i64} {
  func.func @fused_encoder_kernel(%arg0: memref<16x1xi32, #tpu.memory_space<vmem>>, %arg1: memref<64x32xf32, #tpu.memory_space<vmem>>, %arg2: memref<8x32xf32, #tpu.memory_space<vmem>>, %arg3: memref<2x32xf32, #tpu.memory_space<vmem>>, %arg4: memref<16x16xf32, #tpu.memory_space<vmem>>, %arg5: memref<2x16xf32, #tpu.memory_space<vmem>>, %arg6: memref<2x32x96xbf16, #tpu.memory_space<vmem>>, %arg7: memref<2x32x32xbf16, #tpu.memory_space<vmem>>, %arg8: memref<2x32x64xbf16, #tpu.memory_space<vmem>>, %arg9: memref<2x64x32xbf16, #tpu.memory_space<vmem>>, %arg10: memref<2x8x128xf32, #tpu.memory_space<vmem>>, %arg11: memref<3x16x32xf32, #tpu.memory_space<vmem>>, %arg12: memref<2x32xf32, #tpu.memory_space<vmem>>) attributes {dimension_semantics = [], scalar_prefetch = 0 : i64, scratch_operands = 0 : i64, tpu.core_type = #tpu.core_type<tc>} {
    %c0 = arith.constant 0 : index
    %c0_0 = arith.constant 0 : index
    %0 = vector.load %arg0[%c0, %c0_0] : memref<16x1xi32, #tpu.memory_space<vmem>>, vector<16x1xi32>
    %1 = tpu.iota {dimensions = array<i32: 1>} : vector<16x64xi32>
    %2 = vector.broadcast %0 : vector<16x1xi32> to vector<16x64xi32>
    %3 = arith.cmpi eq, %2, %1 : vector<16x64xi32>
    %4 = arith.extui %3 : vector<16x64xi1> to vector<16x64xi32>
    %5 = arith.sitofp %4 : vector<16x64xi32> to vector<16x64xf32>
    %c0_1 = arith.constant 0 : index
    %c0_2 = arith.constant 0 : index
    %6 = vector.load %arg1[%c0_1, %c0_2] : memref<64x32xf32, #tpu.memory_space<vmem>>, vector<64x32xf32>
    %cst = arith.constant dense<0.000000e+00> : vector<16x32xf32>
    %7 = tpu.matmul %5, %6, %cst {dimension_numbers = #tpu.dot_dimension_numbers<[1], [0], [0], [1], [0, 0, 1, 1], [], []>} : vector<16x64xf32>, vector<64x32xf32>, vector<16x32xf32> -> vector<16x32xf32>
    %c0_3 = arith.constant 0 : index
    %c0_4 = arith.constant 0 : index
    %8 = vector.load %arg2[%c0_3, %c0_4] : memref<8x32xf32, #tpu.memory_space<vmem>>, vector<8x32xf32>
    %9 = tpu.concatenate %8, %8 in 0 : vector<8x32xf32>, vector<8x32xf32> -> vector<16x32xf32>
    %10 = arith.addf %7, %9 : vector<16x32xf32>
    %c0_5 = arith.constant 0 : index
    %c0_6 = arith.constant 0 : index
    %11 = vector.load %arg3[%c0_5, %c0_6] : memref<2x32xf32, #tpu.memory_space<vmem>>, vector<2x32xf32>
    %12 = vector.extract_strided_slice %11 {offsets = [0, 0], sizes = [1, 32], strides = [1, 1]} : vector<2x32xf32> to vector<1x32xf32>
    %13 = vector.extract_strided_slice %11 {offsets = [1, 0], sizes = [1, 32], strides = [1, 1]} : vector<2x32xf32> to vector<1x32xf32>
    %cst_7 = arith.constant dense<0.000000e+00> : vector<16xf32>
    %14 = vector.multi_reduction <add>, %10, %cst_7 [1] : vector<16x32xf32> to vector<16xf32>
    %15 = vector.shape_cast %14 : vector<16xf32> to vector<16x1xf32>
    %cst_8 = arith.constant 3.200000e+01 : f32
    %16 = vector.broadcast %cst_8 : f32 to vector<16x1xf32>
    %17 = arith.divf %15, %16 : vector<16x1xf32>
    %18 = vector.broadcast %17 : vector<16x1xf32> to vector<16x32xf32>
    %19 = arith.subf %10, %18 : vector<16x32xf32>
    %20 = arith.mulf %19, %19 : vector<16x32xf32>
    %cst_9 = arith.constant dense<0.000000e+00> : vector<16xf32>
    %21 = vector.multi_reduction <add>, %20, %cst_9 [1] : vector<16x32xf32> to vector<16xf32>
    %22 = vector.shape_cast %21 : vector<16xf32> to vector<16x1xf32>
    %cst_10 = arith.constant 3.200000e+01 : f32
    %23 = vector.broadcast %cst_10 : f32 to vector<16x1xf32>
    %24 = arith.divf %22, %23 : vector<16x1xf32>
    %25 = vector.broadcast %17 : vector<16x1xf32> to vector<16x32xf32>
    %26 = arith.subf %10, %25 : vector<16x32xf32>
    %cst_11 = arith.constant 9.99999996E-13 : f32
    %27 = vector.broadcast %cst_11 : f32 to vector<16x1xf32>
    %28 = arith.addf %24, %27 : vector<16x1xf32>
    %29 = math.rsqrt %28 : vector<16x1xf32>
    %30 = vector.broadcast %29 : vector<16x1xf32> to vector<16x32xf32>
    %31 = arith.mulf %26, %30 : vector<16x32xf32>
    %32 = vector.broadcast %12 : vector<1x32xf32> to vector<16x32xf32>
    %33 = arith.mulf %31, %32 : vector<16x32xf32>
    %34 = vector.broadcast %13 : vector<1x32xf32> to vector<16x32xf32>
    %35 = arith.addf %33, %34 : vector<16x32xf32>
    %c0_12 = arith.constant 0 : index
    %c0_13 = arith.constant 0 : index
    %c0_14 = arith.constant 0 : index
    %36 = vector.load %arg11[%c0_12, %c0_13, %c0_14] : memref<3x16x32xf32, #tpu.memory_space<vmem>>, vector<1x16x32xf32>
    %37 = vector.shape_cast %36 : vector<1x16x32xf32> to vector<16x32xf32>
    %38 = vector.shape_cast %35 : vector<16x32xf32> to vector<1x16x32xf32>
    tpu.vector_store %arg11[%c0_12, %c0_13, %c0_14], %38 {strides = array<i32>} : memref<3x16x32xf32, #tpu.memory_space<vmem>>, vector<1x16x32xf32>,
    %c0_15 = arith.constant 0 : index
    %c0_16 = arith.constant 0 : index
    %39 = vector.load %arg4[%c0_15, %c0_16] : memref<16x16xf32, #tpu.memory_space<vmem>>, vector<16x16xf32>
    %c0_17 = arith.constant 0 : index
    %c0_18 = arith.constant 0 : index
    %c0_19 = arith.constant 0 : index
    %40 = vector.load %arg10[%c0_17, %c0_18, %c0_19] : memref<2x8x128xf32, #tpu.memory_space<vmem>>, vector<1x8x128xf32>
    %41 = vector.shape_cast %40 : vector<1x8x128xf32> to vector<8x128xf32>
    %42 = vector.extract_strided_slice %41 {offsets = [0, 0], sizes = [1, 96], strides = [1, 1]} : vector<8x128xf32> to vector<1x96xf32>
    %43 = vector.extract_strided_slice %41 {offsets = [1, 0], sizes = [1, 32], strides = [1, 1]} : vector<8x128xf32> to vector<1x32xf32>
    %44 = vector.extract_strided_slice %41 {offsets = [2, 0], sizes = [1, 32], strides = [1, 1]} : vector<8x128xf32> to vector<1x32xf32>
    %45 = vector.extract_strided_slice %41 {offsets = [3, 0], sizes = [1, 32], strides = [1, 1]} : vector<8x128xf32> to vector<1x32xf32>
    %46 = vector.extract_strided_slice %41 {offsets = [4, 0], sizes = [1, 64], strides = [1, 1]} : vector<8x128xf32> to vector<1x64xf32>
    %47 = vector.extract_strided_slice %41 {offsets = [5, 0], sizes = [1, 32], strides = [1, 1]} : vector<8x128xf32> to vector<1x32xf32>
    %48 = vector.extract_strided_slice %41 {offsets = [6, 0], sizes = [1, 32], strides = [1, 1]} : vector<8x128xf32> to vector<1x32xf32>
    %49 = vector.extract_strided_slice %41 {offsets = [7, 0], sizes = [1, 32], strides = [1, 1]} : vector<8x128xf32> to vector<1x32xf32>
    %50 = arith.truncf %35 : vector<16x32xf32> to vector<16x32xbf16>
    %c0_20 = arith.constant 0 : index
    %c0_21 = arith.constant 0 : index
    %c0_22 = arith.constant 0 : index
    %51 = vector.load %arg6[%c0_20, %c0_21, %c0_22] : memref<2x32x96xbf16, #tpu.memory_space<vmem>>, vector<1x32x96xbf16>
    %52 = vector.shape_cast %51 : vector<1x32x96xbf16> to vector<32x96xbf16>
    %cst_23 = arith.constant dense<0.000000e+00> : vector<16x96xf32>
    %53 = tpu.matmul %50, %52, %cst_23 {dimension_numbers = #tpu.dot_dimension_numbers<[1], [0], [0], [1], [0, 0, 1, 1], [], []>} : vector<16x32xbf16>, vector<32x96xbf16>, vector<16x96xf32> -> vector<16x96xf32>
    %54 = vector.broadcast %42 : vector<1x96xf32> to vector<16x96xf32>
    %55 = arith.addf %53, %54 : vector<16x96xf32>
    %56 = arith.truncf %55 : vector<16x96xf32> to vector<16x96xbf16>
    %57 = vector.extract_strided_slice %56 {offsets = [0, 0], sizes = [16, 8], strides = [1, 1]} : vector<16x96xbf16> to vector<16x8xbf16>
    %58 = vector.extract_strided_slice %56 {offsets = [0, 32], sizes = [16, 8], strides = [1, 1]} : vector<16x96xbf16> to vector<16x8xbf16>
    %59 = vector.extract_strided_slice %56 {offsets = [0, 64], sizes = [16, 8], strides = [1, 1]} : vector<16x96xbf16> to vector<16x8xbf16>
    %cst_24 = arith.constant dense<0.000000e+00> : vector<16x16xf32>
    %60 = tpu.matmul %57, %58, %cst_24 {dimension_numbers = #tpu.dot_dimension_numbers<[1], [1], [0], [0], [0, 0, 1, 0], [], []>} : vector<16x8xbf16>, vector<16x8xbf16>, vector<16x16xf32> -> vector<16x16xf32>
    %61 = arith.addf %60, %39 : vector<16x16xf32>
    %cst_25 = arith.constant dense<0xFF800000> : vector<16xf32>
    %62 = vector.multi_reduction <maximumf>, %61, %cst_25 [1] : vector<16x16xf32> to vector<16xf32>
    %63 = vector.shape_cast %62 : vector<16xf32> to vector<16x1xf32>
    %64 = vector.broadcast %63 : vector<16x1xf32> to vector<16x16xf32>
    %65 = arith.subf %61, %64 : vector<16x16xf32>
    %66 = math.exp %65 : vector<16x16xf32>
    %cst_26 = arith.constant dense<0.000000e+00> : vector<16xf32>
    %67 = vector.multi_reduction <add>, %66, %cst_26 [1] : vector<16x16xf32> to vector<16xf32>
    %68 = vector.shape_cast %67 : vector<16xf32> to vector<16x1xf32>
    %69 = vector.broadcast %68 : vector<16x1xf32> to vector<16x16xf32>
    %70 = arith.divf %66, %69 : vector<16x16xf32>
    %71 = arith.truncf %70 : vector<16x16xf32> to vector<16x16xbf16>
    %cst_27 = arith.constant dense<0.000000e+00> : vector<16x8xf32>
    %72 = tpu.matmul %71, %59, %cst_27 {dimension_numbers = #tpu.dot_dimension_numbers<[1], [0], [0], [1], [0, 0, 1, 1], [], []>} : vector<16x16xbf16>, vector<16x8xbf16>, vector<16x8xf32> -> vector<16x8xf32>
    %73 = vector.extract_strided_slice %56 {offsets = [0, 8], sizes = [16, 8], strides = [1, 1]} : vector<16x96xbf16> to vector<16x8xbf16>
    %74 = vector.extract_strided_slice %56 {offsets = [0, 40], sizes = [16, 8], strides = [1, 1]} : vector<16x96xbf16> to vector<16x8xbf16>
    %75 = vector.extract_strided_slice %56 {offsets = [0, 72], sizes = [16, 8], strides = [1, 1]} : vector<16x96xbf16> to vector<16x8xbf16>
    %cst_28 = arith.constant dense<0.000000e+00> : vector<16x16xf32>
    %76 = tpu.matmul %73, %74, %cst_28 {dimension_numbers = #tpu.dot_dimension_numbers<[1], [1], [0], [0], [0, 0, 1, 0], [], []>} : vector<16x8xbf16>, vector<16x8xbf16>, vector<16x16xf32> -> vector<16x16xf32>
    %77 = arith.addf %76, %39 : vector<16x16xf32>
    %cst_29 = arith.constant dense<0xFF800000> : vector<16xf32>
    %78 = vector.multi_reduction <maximumf>, %77, %cst_29 [1] : vector<16x16xf32> to vector<16xf32>
    %79 = vector.shape_cast %78 : vector<16xf32> to vector<16x1xf32>
    %80 = vector.broadcast %79 : vector<16x1xf32> to vector<16x16xf32>
    %81 = arith.subf %77, %80 : vector<16x16xf32>
    %82 = math.exp %81 : vector<16x16xf32>
    %cst_30 = arith.constant dense<0.000000e+00> : vector<16xf32>
    %83 = vector.multi_reduction <add>, %82, %cst_30 [1] : vector<16x16xf32> to vector<16xf32>
    %84 = vector.shape_cast %83 : vector<16xf32> to vector<16x1xf32>
    %85 = vector.broadcast %84 : vector<16x1xf32> to vector<16x16xf32>
    %86 = arith.divf %82, %85 : vector<16x16xf32>
    %87 = arith.truncf %86 : vector<16x16xf32> to vector<16x16xbf16>
    %cst_31 = arith.constant dense<0.000000e+00> : vector<16x8xf32>
    %88 = tpu.matmul %87, %75, %cst_31 {dimension_numbers = #tpu.dot_dimension_numbers<[1], [0], [0], [1], [0, 0, 1, 1], [], []>} : vector<16x16xbf16>, vector<16x8xbf16>, vector<16x8xf32> -> vector<16x8xf32>
    %89 = vector.extract_strided_slice %56 {offsets = [0, 16], sizes = [16, 8], strides = [1, 1]} : vector<16x96xbf16> to vector<16x8xbf16>
    %90 = vector.extract_strided_slice %56 {offsets = [0, 48], sizes = [16, 8], strides = [1, 1]} : vector<16x96xbf16> to vector<16x8xbf16>
    %91 = vector.extract_strided_slice %56 {offsets = [0, 80], sizes = [16, 8], strides = [1, 1]} : vector<16x96xbf16> to vector<16x8xbf16>
    %cst_32 = arith.constant dense<0.000000e+00> : vector<16x16xf32>
    %92 = tpu.matmul %89, %90, %cst_32 {dimension_numbers = #tpu.dot_dimension_numbers<[1], [1], [0], [0], [0, 0, 1, 0], [], []>} : vector<16x8xbf16>, vector<16x8xbf16>, vector<16x16xf32> -> vector<16x16xf32>
    %93 = arith.addf %92, %39 : vector<16x16xf32>
    %cst_33 = arith.constant dense<0xFF800000> : vector<16xf32>
    %94 = vector.multi_reduction <maximumf>, %93, %cst_33 [1] : vector<16x16xf32> to vector<16xf32>
    %95 = vector.shape_cast %94 : vector<16xf32> to vector<16x1xf32>
    %96 = vector.broadcast %95 : vector<16x1xf32> to vector<16x16xf32>
    %97 = arith.subf %93, %96 : vector<16x16xf32>
    %98 = math.exp %97 : vector<16x16xf32>
    %cst_34 = arith.constant dense<0.000000e+00> : vector<16xf32>
    %99 = vector.multi_reduction <add>, %98, %cst_34 [1] : vector<16x16xf32> to vector<16xf32>
    %100 = vector.shape_cast %99 : vector<16xf32> to vector<16x1xf32>
    %101 = vector.broadcast %100 : vector<16x1xf32> to vector<16x16xf32>
    %102 = arith.divf %98, %101 : vector<16x16xf32>
    %103 = arith.truncf %102 : vector<16x16xf32> to vector<16x16xbf16>
    %cst_35 = arith.constant dense<0.000000e+00> : vector<16x8xf32>
    %104 = tpu.matmul %103, %91, %cst_35 {dimension_numbers = #tpu.dot_dimension_numbers<[1], [0], [0], [1], [0, 0, 1, 1], [], []>} : vector<16x16xbf16>, vector<16x8xbf16>, vector<16x8xf32> -> vector<16x8xf32>
    %105 = vector.extract_strided_slice %56 {offsets = [0, 24], sizes = [16, 8], strides = [1, 1]} : vector<16x96xbf16> to vector<16x8xbf16>
    %106 = vector.extract_strided_slice %56 {offsets = [0, 56], sizes = [16, 8], strides = [1, 1]} : vector<16x96xbf16> to vector<16x8xbf16>
    %107 = vector.extract_strided_slice %56 {offsets = [0, 88], sizes = [16, 8], strides = [1, 1]} : vector<16x96xbf16> to vector<16x8xbf16>
    %cst_36 = arith.constant dense<0.000000e+00> : vector<16x16xf32>
    %108 = tpu.matmul %105, %106, %cst_36 {dimension_numbers = #tpu.dot_dimension_numbers<[1], [1], [0], [0], [0, 0, 1, 0], [], []>} : vector<16x8xbf16>, vector<16x8xbf16>, vector<16x16xf32> -> vector<16x16xf32>
    %109 = arith.addf %108, %39 : vector<16x16xf32>
    %cst_37 = arith.constant dense<0xFF800000> : vector<16xf32>
    %110 = vector.multi_reduction <maximumf>, %109, %cst_37 [1] : vector<16x16xf32> to vector<16xf32>
    %111 = vector.shape_cast %110 : vector<16xf32> to vector<16x1xf32>
    %112 = vector.broadcast %111 : vector<16x1xf32> to vector<16x16xf32>
    %113 = arith.subf %109, %112 : vector<16x16xf32>
    %114 = math.exp %113 : vector<16x16xf32>
    %cst_38 = arith.constant dense<0.000000e+00> : vector<16xf32>
    %115 = vector.multi_reduction <add>, %114, %cst_38 [1] : vector<16x16xf32> to vector<16xf32>
    %116 = vector.shape_cast %115 : vector<16xf32> to vector<16x1xf32>
    %117 = vector.broadcast %116 : vector<16x1xf32> to vector<16x16xf32>
    %118 = arith.divf %114, %117 : vector<16x16xf32>
    %119 = arith.truncf %118 : vector<16x16xf32> to vector<16x16xbf16>
    %cst_39 = arith.constant dense<0.000000e+00> : vector<16x8xf32>
    %120 = tpu.matmul %119, %107, %cst_39 {dimension_numbers = #tpu.dot_dimension_numbers<[1], [0], [0], [1], [0, 0, 1, 1], [], []>} : vector<16x16xbf16>, vector<16x8xbf16>, vector<16x8xf32> -> vector<16x8xf32>
    %121 = tpu.concatenate %72, %88, %104, %120 in 1 : vector<16x8xf32>, vector<16x8xf32>, vector<16x8xf32>, vector<16x8xf32> -> vector<16x32xf32>
    %122 = arith.truncf %121 : vector<16x32xf32> to vector<16x32xbf16>
    %c0_40 = arith.constant 0 : index
    %c0_41 = arith.constant 0 : index
    %c0_42 = arith.constant 0 : index
    %123 = vector.load %arg7[%c0_40, %c0_41, %c0_42] : memref<2x32x32xbf16, #tpu.memory_space<vmem>>, vector<1x32x32xbf16>
    %124 = vector.shape_cast %123 : vector<1x32x32xbf16> to vector<32x32xbf16>
    %cst_43 = arith.constant dense<0.000000e+00> : vector<16x32xf32>
    %125 = tpu.matmul %122, %124, %cst_43 {dimension_numbers = #tpu.dot_dimension_numbers<[1], [0], [0], [1], [0, 0, 1, 1], [], []>} : vector<16x32xbf16>, vector<32x32xbf16>, vector<16x32xf32> -> vector<16x32xf32>
    %126 = vector.broadcast %43 : vector<1x32xf32> to vector<16x32xf32>
    %127 = arith.addf %125, %126 : vector<16x32xf32>
    %128 = arith.addf %35, %127 : vector<16x32xf32>
    %cst_44 = arith.constant dense<0.000000e+00> : vector<16xf32>
    %129 = vector.multi_reduction <add>, %128, %cst_44 [1] : vector<16x32xf32> to vector<16xf32>
    %130 = vector.shape_cast %129 : vector<16xf32> to vector<16x1xf32>
    %cst_45 = arith.constant 3.200000e+01 : f32
    %131 = vector.broadcast %cst_45 : f32 to vector<16x1xf32>
    %132 = arith.divf %130, %131 : vector<16x1xf32>
    %133 = vector.broadcast %132 : vector<16x1xf32> to vector<16x32xf32>
    %134 = arith.subf %128, %133 : vector<16x32xf32>
    %135 = arith.mulf %134, %134 : vector<16x32xf32>
    %cst_46 = arith.constant dense<0.000000e+00> : vector<16xf32>
    %136 = vector.multi_reduction <add>, %135, %cst_46 [1] : vector<16x32xf32> to vector<16xf32>
    %137 = vector.shape_cast %136 : vector<16xf32> to vector<16x1xf32>
    %cst_47 = arith.constant 3.200000e+01 : f32
    %138 = vector.broadcast %cst_47 : f32 to vector<16x1xf32>
    %139 = arith.divf %137, %138 : vector<16x1xf32>
    %140 = vector.broadcast %132 : vector<16x1xf32> to vector<16x32xf32>
    %141 = arith.subf %128, %140 : vector<16x32xf32>
    %cst_48 = arith.constant 9.99999996E-13 : f32
    %142 = vector.broadcast %cst_48 : f32 to vector<16x1xf32>
    %143 = arith.addf %139, %142 : vector<16x1xf32>
    %144 = math.rsqrt %143 : vector<16x1xf32>
    %145 = vector.broadcast %144 : vector<16x1xf32> to vector<16x32xf32>
    %146 = arith.mulf %141, %145 : vector<16x32xf32>
    %147 = vector.broadcast %44 : vector<1x32xf32> to vector<16x32xf32>
    %148 = arith.mulf %146, %147 : vector<16x32xf32>
    %149 = vector.broadcast %45 : vector<1x32xf32> to vector<16x32xf32>
    %150 = arith.addf %148, %149 : vector<16x32xf32>
    %151 = arith.truncf %150 : vector<16x32xf32> to vector<16x32xbf16>
    %c0_49 = arith.constant 0 : index
    %c0_50 = arith.constant 0 : index
    %c0_51 = arith.constant 0 : index
    %152 = vector.load %arg8[%c0_49, %c0_50, %c0_51] : memref<2x32x64xbf16, #tpu.memory_space<vmem>>, vector<1x32x64xbf16>
    %153 = vector.shape_cast %152 : vector<1x32x64xbf16> to vector<32x64xbf16>
    %cst_52 = arith.constant dense<0.000000e+00> : vector<16x64xf32>
    %154 = tpu.matmul %151, %153, %cst_52 {dimension_numbers = #tpu.dot_dimension_numbers<[1], [0], [0], [1], [0, 0, 1, 1], [], []>} : vector<16x32xbf16>, vector<32x64xbf16>, vector<16x64xf32> -> vector<16x64xf32>
    %155 = vector.broadcast %46 : vector<1x64xf32> to vector<16x64xf32>
    %156 = arith.addf %154, %155 : vector<16x64xf32>
    %157 = arith.mulf %156, %156 : vector<16x64xf32>
    %158 = arith.mulf %156, %157 : vector<16x64xf32>
    %cst_53 = arith.constant 4.471500e-02 : f32
    %159 = vector.broadcast %cst_53 : f32 to vector<16x64xf32>
    %160 = arith.mulf %159, %158 : vector<16x64xf32>
    %161 = arith.addf %156, %160 : vector<16x64xf32>
    %cst_54 = arith.constant 0.797884583 : f32
    %162 = vector.broadcast %cst_54 : f32 to vector<16x64xf32>
    %163 = arith.mulf %162, %161 : vector<16x64xf32>
    %164 = math.tanh %163 : vector<16x64xf32>
    %cst_55 = arith.constant 1.000000e+00 : f32
    %165 = vector.broadcast %cst_55 : f32 to vector<16x64xf32>
    %166 = arith.addf %165, %164 : vector<16x64xf32>
    %cst_56 = arith.constant 5.000000e-01 : f32
    %167 = vector.broadcast %cst_56 : f32 to vector<16x64xf32>
    %168 = arith.mulf %167, %166 : vector<16x64xf32>
    %169 = arith.mulf %156, %168 : vector<16x64xf32>
    %170 = arith.truncf %169 : vector<16x64xf32> to vector<16x64xbf16>
    %c0_57 = arith.constant 0 : index
    %c0_58 = arith.constant 0 : index
    %c0_59 = arith.constant 0 : index
    %171 = vector.load %arg9[%c0_57, %c0_58, %c0_59] : memref<2x64x32xbf16, #tpu.memory_space<vmem>>, vector<1x64x32xbf16>
    %172 = vector.shape_cast %171 : vector<1x64x32xbf16> to vector<64x32xbf16>
    %cst_60 = arith.constant dense<0.000000e+00> : vector<16x32xf32>
    %173 = tpu.matmul %170, %172, %cst_60 {dimension_numbers = #tpu.dot_dimension_numbers<[1], [0], [0], [1], [0, 0, 1, 1], [], []>} : vector<16x64xbf16>, vector<64x32xbf16>, vector<16x32xf32> -> vector<16x32xf32>
    %174 = vector.broadcast %47 : vector<1x32xf32> to vector<16x32xf32>
    %175 = arith.addf %173, %174 : vector<16x32xf32>
    %176 = arith.addf %150, %175 : vector<16x32xf32>
    %cst_61 = arith.constant dense<0.000000e+00> : vector<16xf32>
    %177 = vector.multi_reduction <add>, %176, %cst_61 [1] : vector<16x32xf32> to vector<16xf32>
    %178 = vector.shape_cast %177 : vector<16xf32> to vector<16x1xf32>
    %cst_62 = arith.constant 3.200000e+01 : f32
    %179 = vector.broadcast %cst_62 : f32 to vector<16x1xf32>
    %180 = arith.divf %178, %179 : vector<16x1xf32>
    %181 = vector.broadcast %180 : vector<16x1xf32> to vector<16x32xf32>
    %182 = arith.subf %176, %181 : vector<16x32xf32>
    %183 = arith.mulf %182, %182 : vector<16x32xf32>
    %cst_63 = arith.constant dense<0.000000e+00> : vector<16xf32>
    %184 = vector.multi_reduction <add>, %183, %cst_63 [1] : vector<16x32xf32> to vector<16xf32>
    %185 = vector.shape_cast %184 : vector<16xf32> to vector<16x1xf32>
    %cst_64 = arith.constant 3.200000e+01 : f32
    %186 = vector.broadcast %cst_64 : f32 to vector<16x1xf32>
    %187 = arith.divf %185, %186 : vector<16x1xf32>
    %188 = vector.broadcast %180 : vector<16x1xf32> to vector<16x32xf32>
    %189 = arith.subf %176, %188 : vector<16x32xf32>
    %cst_65 = arith.constant 9.99999996E-13 : f32
    %190 = vector.broadcast %cst_65 : f32 to vector<16x1xf32>
    %191 = arith.addf %187, %190 : vector<16x1xf32>
    %192 = math.rsqrt %191 : vector<16x1xf32>
    %193 = vector.broadcast %192 : vector<16x1xf32> to vector<16x32xf32>
    %194 = arith.mulf %189, %193 : vector<16x32xf32>
    %195 = vector.broadcast %48 : vector<1x32xf32> to vector<16x32xf32>
    %196 = arith.mulf %194, %195 : vector<16x32xf32>
    %197 = vector.broadcast %49 : vector<1x32xf32> to vector<16x32xf32>
    %198 = arith.addf %196, %197 : vector<16x32xf32>
    %c1 = arith.constant 1 : index
    %c0_66 = arith.constant 0 : index
    %c0_67 = arith.constant 0 : index
    %199 = vector.load %arg11[%c1, %c0_66, %c0_67] : memref<3x16x32xf32, #tpu.memory_space<vmem>>, vector<1x16x32xf32>
    %200 = vector.shape_cast %199 : vector<1x16x32xf32> to vector<16x32xf32>
    %201 = vector.shape_cast %198 : vector<16x32xf32> to vector<1x16x32xf32>
    tpu.vector_store %arg11[%c1, %c0_66, %c0_67], %201 {strides = array<i32>} : memref<3x16x32xf32, #tpu.memory_space<vmem>>, vector<1x16x32xf32>,
    %c1_68 = arith.constant 1 : index
    %c0_69 = arith.constant 0 : index
    %c0_70 = arith.constant 0 : index
    %202 = vector.load %arg10[%c1_68, %c0_69, %c0_70] : memref<2x8x128xf32, #tpu.memory_space<vmem>>, vector<1x8x128xf32>
    %203 = vector.shape_cast %202 : vector<1x8x128xf32> to vector<8x128xf32>
    %204 = vector.extract_strided_slice %203 {offsets = [0, 0], sizes = [1, 96], strides = [1, 1]} : vector<8x128xf32> to vector<1x96xf32>
    %205 = vector.extract_strided_slice %203 {offsets = [1, 0], sizes = [1, 32], strides = [1, 1]} : vector<8x128xf32> to vector<1x32xf32>
    %206 = vector.extract_strided_slice %203 {offsets = [2, 0], sizes = [1, 32], strides = [1, 1]} : vector<8x128xf32> to vector<1x32xf32>
    %207 = vector.extract_strided_slice %203 {offsets = [3, 0], sizes = [1, 32], strides = [1, 1]} : vector<8x128xf32> to vector<1x32xf32>
    %208 = vector.extract_strided_slice %203 {offsets = [4, 0], sizes = [1, 64], strides = [1, 1]} : vector<8x128xf32> to vector<1x64xf32>
    %209 = vector.extract_strided_slice %203 {offsets = [5, 0], sizes = [1, 32], strides = [1, 1]} : vector<8x128xf32> to vector<1x32xf32>
    %210 = vector.extract_strided_slice %203 {offsets = [6, 0], sizes = [1, 32], strides = [1, 1]} : vector<8x128xf32> to vector<1x32xf32>
    %211 = vector.extract_strided_slice %203 {offsets = [7, 0], sizes = [1, 32], strides = [1, 1]} : vector<8x128xf32> to vector<1x32xf32>
    %212 = arith.truncf %198 : vector<16x32xf32> to vector<16x32xbf16>
    %c1_71 = arith.constant 1 : index
    %c0_72 = arith.constant 0 : index
    %c0_73 = arith.constant 0 : index
    %213 = vector.load %arg6[%c1_71, %c0_72, %c0_73] : memref<2x32x96xbf16, #tpu.memory_space<vmem>>, vector<1x32x96xbf16>
    %214 = vector.shape_cast %213 : vector<1x32x96xbf16> to vector<32x96xbf16>
    %cst_74 = arith.constant dense<0.000000e+00> : vector<16x96xf32>
    %215 = tpu.matmul %212, %214, %cst_74 {dimension_numbers = #tpu.dot_dimension_numbers<[1], [0], [0], [1], [0, 0, 1, 1], [], []>} : vector<16x32xbf16>, vector<32x96xbf16>, vector<16x96xf32> -> vector<16x96xf32>
    %216 = vector.broadcast %204 : vector<1x96xf32> to vector<16x96xf32>
    %217 = arith.addf %215, %216 : vector<16x96xf32>
    %218 = arith.truncf %217 : vector<16x96xf32> to vector<16x96xbf16>
    %219 = vector.extract_strided_slice %218 {offsets = [0, 0], sizes = [16, 8], strides = [1, 1]} : vector<16x96xbf16> to vector<16x8xbf16>
    %220 = vector.extract_strided_slice %218 {offsets = [0, 32], sizes = [16, 8], strides = [1, 1]} : vector<16x96xbf16> to vector<16x8xbf16>
    %221 = vector.extract_strided_slice %218 {offsets = [0, 64], sizes = [16, 8], strides = [1, 1]} : vector<16x96xbf16> to vector<16x8xbf16>
    %cst_75 = arith.constant dense<0.000000e+00> : vector<16x16xf32>
    %222 = tpu.matmul %219, %220, %cst_75 {dimension_numbers = #tpu.dot_dimension_numbers<[1], [1], [0], [0], [0, 0, 1, 0], [], []>} : vector<16x8xbf16>, vector<16x8xbf16>, vector<16x16xf32> -> vector<16x16xf32>
    %223 = arith.addf %222, %39 : vector<16x16xf32>
    %cst_76 = arith.constant dense<0xFF800000> : vector<16xf32>
    %224 = vector.multi_reduction <maximumf>, %223, %cst_76 [1] : vector<16x16xf32> to vector<16xf32>
    %225 = vector.shape_cast %224 : vector<16xf32> to vector<16x1xf32>
    %226 = vector.broadcast %225 : vector<16x1xf32> to vector<16x16xf32>
    %227 = arith.subf %223, %226 : vector<16x16xf32>
    %228 = math.exp %227 : vector<16x16xf32>
    %cst_77 = arith.constant dense<0.000000e+00> : vector<16xf32>
    %229 = vector.multi_reduction <add>, %228, %cst_77 [1] : vector<16x16xf32> to vector<16xf32>
    %230 = vector.shape_cast %229 : vector<16xf32> to vector<16x1xf32>
    %231 = vector.broadcast %230 : vector<16x1xf32> to vector<16x16xf32>
    %232 = arith.divf %228, %231 : vector<16x16xf32>
    %233 = arith.truncf %232 : vector<16x16xf32> to vector<16x16xbf16>
    %cst_78 = arith.constant dense<0.000000e+00> : vector<16x8xf32>
    %234 = tpu.matmul %233, %221, %cst_78 {dimension_numbers = #tpu.dot_dimension_numbers<[1], [0], [0], [1], [0, 0, 1, 1], [], []>} : vector<16x16xbf16>, vector<16x8xbf16>, vector<16x8xf32> -> vector<16x8xf32>
    %235 = vector.extract_strided_slice %218 {offsets = [0, 8], sizes = [16, 8], strides = [1, 1]} : vector<16x96xbf16> to vector<16x8xbf16>
    %236 = vector.extract_strided_slice %218 {offsets = [0, 40], sizes = [16, 8], strides = [1, 1]} : vector<16x96xbf16> to vector<16x8xbf16>
    %237 = vector.extract_strided_slice %218 {offsets = [0, 72], sizes = [16, 8], strides = [1, 1]} : vector<16x96xbf16> to vector<16x8xbf16>
    %cst_79 = arith.constant dense<0.000000e+00> : vector<16x16xf32>
    %238 = tpu.matmul %235, %236, %cst_79 {dimension_numbers = #tpu.dot_dimension_numbers<[1], [1], [0], [0], [0, 0, 1, 0], [], []>} : vector<16x8xbf16>, vector<16x8xbf16>, vector<16x16xf32> -> vector<16x16xf32>
    %239 = arith.addf %238, %39 : vector<16x16xf32>
    %cst_80 = arith.constant dense<0xFF800000> : vector<16xf32>
    %240 = vector.multi_reduction <maximumf>, %239, %cst_80 [1] : vector<16x16xf32> to vector<16xf32>
    %241 = vector.shape_cast %240 : vector<16xf32> to vector<16x1xf32>
    %242 = vector.broadcast %241 : vector<16x1xf32> to vector<16x16xf32>
    %243 = arith.subf %239, %242 : vector<16x16xf32>
    %244 = math.exp %243 : vector<16x16xf32>
    %cst_81 = arith.constant dense<0.000000e+00> : vector<16xf32>
    %245 = vector.multi_reduction <add>, %244, %cst_81 [1] : vector<16x16xf32> to vector<16xf32>
    %246 = vector.shape_cast %245 : vector<16xf32> to vector<16x1xf32>
    %247 = vector.broadcast %246 : vector<16x1xf32> to vector<16x16xf32>
    %248 = arith.divf %244, %247 : vector<16x16xf32>
    %249 = arith.truncf %248 : vector<16x16xf32> to vector<16x16xbf16>
    %cst_82 = arith.constant dense<0.000000e+00> : vector<16x8xf32>
    %250 = tpu.matmul %249, %237, %cst_82 {dimension_numbers = #tpu.dot_dimension_numbers<[1], [0], [0], [1], [0, 0, 1, 1], [], []>} : vector<16x16xbf16>, vector<16x8xbf16>, vector<16x8xf32> -> vector<16x8xf32>
    %251 = vector.extract_strided_slice %218 {offsets = [0, 16], sizes = [16, 8], strides = [1, 1]} : vector<16x96xbf16> to vector<16x8xbf16>
    %252 = vector.extract_strided_slice %218 {offsets = [0, 48], sizes = [16, 8], strides = [1, 1]} : vector<16x96xbf16> to vector<16x8xbf16>
    %253 = vector.extract_strided_slice %218 {offsets = [0, 80], sizes = [16, 8], strides = [1, 1]} : vector<16x96xbf16> to vector<16x8xbf16>
    %cst_83 = arith.constant dense<0.000000e+00> : vector<16x16xf32>
    %254 = tpu.matmul %251, %252, %cst_83 {dimension_numbers = #tpu.dot_dimension_numbers<[1], [1], [0], [0], [0, 0, 1, 0], [], []>} : vector<16x8xbf16>, vector<16x8xbf16>, vector<16x16xf32> -> vector<16x16xf32>
    %255 = arith.addf %254, %39 : vector<16x16xf32>
    %cst_84 = arith.constant dense<0xFF800000> : vector<16xf32>
    %256 = vector.multi_reduction <maximumf>, %255, %cst_84 [1] : vector<16x16xf32> to vector<16xf32>
    %257 = vector.shape_cast %256 : vector<16xf32> to vector<16x1xf32>
    %258 = vector.broadcast %257 : vector<16x1xf32> to vector<16x16xf32>
    %259 = arith.subf %255, %258 : vector<16x16xf32>
    %260 = math.exp %259 : vector<16x16xf32>
    %cst_85 = arith.constant dense<0.000000e+00> : vector<16xf32>
    %261 = vector.multi_reduction <add>, %260, %cst_85 [1] : vector<16x16xf32> to vector<16xf32>
    %262 = vector.shape_cast %261 : vector<16xf32> to vector<16x1xf32>
    %263 = vector.broadcast %262 : vector<16x1xf32> to vector<16x16xf32>
    %264 = arith.divf %260, %263 : vector<16x16xf32>
    %265 = arith.truncf %264 : vector<16x16xf32> to vector<16x16xbf16>
    %cst_86 = arith.constant dense<0.000000e+00> : vector<16x8xf32>
    %266 = tpu.matmul %265, %253, %cst_86 {dimension_numbers = #tpu.dot_dimension_numbers<[1], [0], [0], [1], [0, 0, 1, 1], [], []>} : vector<16x16xbf16>, vector<16x8xbf16>, vector<16x8xf32> -> vector<16x8xf32>
    %267 = vector.extract_strided_slice %218 {offsets = [0, 24], sizes = [16, 8], strides = [1, 1]} : vector<16x96xbf16> to vector<16x8xbf16>
    %268 = vector.extract_strided_slice %218 {offsets = [0, 56], sizes = [16, 8], strides = [1, 1]} : vector<16x96xbf16> to vector<16x8xbf16>
    %269 = vector.extract_strided_slice %218 {offsets = [0, 88], sizes = [16, 8], strides = [1, 1]} : vector<16x96xbf16> to vector<16x8xbf16>
    %cst_87 = arith.constant dense<0.000000e+00> : vector<16x16xf32>
    %270 = tpu.matmul %267, %268, %cst_87 {dimension_numbers = #tpu.dot_dimension_numbers<[1], [1], [0], [0], [0, 0, 1, 0], [], []>} : vector<16x8xbf16>, vector<16x8xbf16>, vector<16x16xf32> -> vector<16x16xf32>
    %271 = arith.addf %270, %39 : vector<16x16xf32>
    %cst_88 = arith.constant dense<0xFF800000> : vector<16xf32>
    %272 = vector.multi_reduction <maximumf>, %271, %cst_88 [1] : vector<16x16xf32> to vector<16xf32>
    %273 = vector.shape_cast %272 : vector<16xf32> to vector<16x1xf32>
    %274 = vector.broadcast %273 : vector<16x1xf32> to vector<16x16xf32>
    %275 = arith.subf %271, %274 : vector<16x16xf32>
    %276 = math.exp %275 : vector<16x16xf32>
    %cst_89 = arith.constant dense<0.000000e+00> : vector<16xf32>
    %277 = vector.multi_reduction <add>, %276, %cst_89 [1] : vector<16x16xf32> to vector<16xf32>
    %278 = vector.shape_cast %277 : vector<16xf32> to vector<16x1xf32>
    %279 = vector.broadcast %278 : vector<16x1xf32> to vector<16x16xf32>
    %280 = arith.divf %276, %279 : vector<16x16xf32>
    %281 = arith.truncf %280 : vector<16x16xf32> to vector<16x16xbf16>
    %cst_90 = arith.constant dense<0.000000e+00> : vector<16x8xf32>
    %282 = tpu.matmul %281, %269, %cst_90 {dimension_numbers = #tpu.dot_dimension_numbers<[1], [0], [0], [1], [0, 0, 1, 1], [], []>} : vector<16x16xbf16>, vector<16x8xbf16>, vector<16x8xf32> -> vector<16x8xf32>
    %283 = tpu.concatenate %234, %250, %266, %282 in 1 : vector<16x8xf32>, vector<16x8xf32>, vector<16x8xf32>, vector<16x8xf32> -> vector<16x32xf32>
    %284 = arith.truncf %283 : vector<16x32xf32> to vector<16x32xbf16>
    %c1_91 = arith.constant 1 : index
    %c0_92 = arith.constant 0 : index
    %c0_93 = arith.constant 0 : index
    %285 = vector.load %arg7[%c1_91, %c0_92, %c0_93] : memref<2x32x32xbf16, #tpu.memory_space<vmem>>, vector<1x32x32xbf16>
    %286 = vector.shape_cast %285 : vector<1x32x32xbf16> to vector<32x32xbf16>
    %cst_94 = arith.constant dense<0.000000e+00> : vector<16x32xf32>
    %287 = tpu.matmul %284, %286, %cst_94 {dimension_numbers = #tpu.dot_dimension_numbers<[1], [0], [0], [1], [0, 0, 1, 1], [], []>} : vector<16x32xbf16>, vector<32x32xbf16>, vector<16x32xf32> -> vector<16x32xf32>
    %288 = vector.broadcast %205 : vector<1x32xf32> to vector<16x32xf32>
    %289 = arith.addf %287, %288 : vector<16x32xf32>
    %290 = arith.addf %198, %289 : vector<16x32xf32>
    %cst_95 = arith.constant dense<0.000000e+00> : vector<16xf32>
    %291 = vector.multi_reduction <add>, %290, %cst_95 [1] : vector<16x32xf32> to vector<16xf32>
    %292 = vector.shape_cast %291 : vector<16xf32> to vector<16x1xf32>
    %cst_96 = arith.constant 3.200000e+01 : f32
    %293 = vector.broadcast %cst_96 : f32 to vector<16x1xf32>
    %294 = arith.divf %292, %293 : vector<16x1xf32>
    %295 = vector.broadcast %294 : vector<16x1xf32> to vector<16x32xf32>
    %296 = arith.subf %290, %295 : vector<16x32xf32>
    %297 = arith.mulf %296, %296 : vector<16x32xf32>
    %cst_97 = arith.constant dense<0.000000e+00> : vector<16xf32>
    %298 = vector.multi_reduction <add>, %297, %cst_97 [1] : vector<16x32xf32> to vector<16xf32>
    %299 = vector.shape_cast %298 : vector<16xf32> to vector<16x1xf32>
    %cst_98 = arith.constant 3.200000e+01 : f32
    %300 = vector.broadcast %cst_98 : f32 to vector<16x1xf32>
    %301 = arith.divf %299, %300 : vector<16x1xf32>
    %302 = vector.broadcast %294 : vector<16x1xf32> to vector<16x32xf32>
    %303 = arith.subf %290, %302 : vector<16x32xf32>
    %cst_99 = arith.constant 9.99999996E-13 : f32
    %304 = vector.broadcast %cst_99 : f32 to vector<16x1xf32>
    %305 = arith.addf %301, %304 : vector<16x1xf32>
    %306 = math.rsqrt %305 : vector<16x1xf32>
    %307 = vector.broadcast %306 : vector<16x1xf32> to vector<16x32xf32>
    %308 = arith.mulf %303, %307 : vector<16x32xf32>
    %309 = vector.broadcast %206 : vector<1x32xf32> to vector<16x32xf32>
    %310 = arith.mulf %308, %309 : vector<16x32xf32>
    %311 = vector.broadcast %207 : vector<1x32xf32> to vector<16x32xf32>
    %312 = arith.addf %310, %311 : vector<16x32xf32>
    %313 = arith.truncf %312 : vector<16x32xf32> to vector<16x32xbf16>
    %c1_100 = arith.constant 1 : index
    %c0_101 = arith.constant 0 : index
    %c0_102 = arith.constant 0 : index
    %314 = vector.load %arg8[%c1_100, %c0_101, %c0_102] : memref<2x32x64xbf16, #tpu.memory_space<vmem>>, vector<1x32x64xbf16>
    %315 = vector.shape_cast %314 : vector<1x32x64xbf16> to vector<32x64xbf16>
    %cst_103 = arith.constant dense<0.000000e+00> : vector<16x64xf32>
    %316 = tpu.matmul %313, %315, %cst_103 {dimension_numbers = #tpu.dot_dimension_numbers<[1], [0], [0], [1], [0, 0, 1, 1], [], []>} : vector<16x32xbf16>, vector<32x64xbf16>, vector<16x64xf32> -> vector<16x64xf32>
    %317 = vector.broadcast %208 : vector<1x64xf32> to vector<16x64xf32>
    %318 = arith.addf %316, %317 : vector<16x64xf32>
    %319 = arith.mulf %318, %318 : vector<16x64xf32>
    %320 = arith.mulf %318, %319 : vector<16x64xf32>
    %cst_104 = arith.constant 4.471500e-02 : f32
    %321 = vector.broadcast %cst_104 : f32 to vector<16x64xf32>
    %322 = arith.mulf %321, %320 : vector<16x64xf32>
    %323 = arith.addf %318, %322 : vector<16x64xf32>
    %cst_105 = arith.constant 0.797884583 : f32
    %324 = vector.broadcast %cst_105 : f32 to vector<16x64xf32>
    %325 = arith.mulf %324, %323 : vector<16x64xf32>
    %326 = math.tanh %325 : vector<16x64xf32>
    %cst_106 = arith.constant 1.000000e+00 : f32
    %327 = vector.broadcast %cst_106 : f32 to vector<16x64xf32>
    %328 = arith.addf %327, %326 : vector<16x64xf32>
    %cst_107 = arith.constant 5.000000e-01 : f32
    %329 = vector.broadcast %cst_107 : f32 to vector<16x64xf32>
    %330 = arith.mulf %329, %328 : vector<16x64xf32>
    %331 = arith.mulf %318, %330 : vector<16x64xf32>
    %332 = arith.truncf %331 : vector<16x64xf32> to vector<16x64xbf16>
    %c1_108 = arith.constant 1 : index
    %c0_109 = arith.constant 0 : index
    %c0_110 = arith.constant 0 : index
    %333 = vector.load %arg9[%c1_108, %c0_109, %c0_110] : memref<2x64x32xbf16, #tpu.memory_space<vmem>>, vector<1x64x32xbf16>
    %334 = vector.shape_cast %333 : vector<1x64x32xbf16> to vector<64x32xbf16>
    %cst_111 = arith.constant dense<0.000000e+00> : vector<16x32xf32>
    %335 = tpu.matmul %332, %334, %cst_111 {dimension_numbers = #tpu.dot_dimension_numbers<[1], [0], [0], [1], [0, 0, 1, 1], [], []>} : vector<16x64xbf16>, vector<64x32xbf16>, vector<16x32xf32> -> vector<16x32xf32>
    %336 = vector.broadcast %209 : vector<1x32xf32> to vector<16x32xf32>
    %337 = arith.addf %335, %336 : vector<16x32xf32>
    %338 = arith.addf %312, %337 : vector<16x32xf32>
    %cst_112 = arith.constant dense<0.000000e+00> : vector<16xf32>
    %339 = vector.multi_reduction <add>, %338, %cst_112 [1] : vector<16x32xf32> to vector<16xf32>
    %340 = vector.shape_cast %339 : vector<16xf32> to vector<16x1xf32>
    %cst_113 = arith.constant 3.200000e+01 : f32
    %341 = vector.broadcast %cst_113 : f32 to vector<16x1xf32>
    %342 = arith.divf %340, %341 : vector<16x1xf32>
    %343 = vector.broadcast %342 : vector<16x1xf32> to vector<16x32xf32>
    %344 = arith.subf %338, %343 : vector<16x32xf32>
    %345 = arith.mulf %344, %344 : vector<16x32xf32>
    %cst_114 = arith.constant dense<0.000000e+00> : vector<16xf32>
    %346 = vector.multi_reduction <add>, %345, %cst_114 [1] : vector<16x32xf32> to vector<16xf32>
    %347 = vector.shape_cast %346 : vector<16xf32> to vector<16x1xf32>
    %cst_115 = arith.constant 3.200000e+01 : f32
    %348 = vector.broadcast %cst_115 : f32 to vector<16x1xf32>
    %349 = arith.divf %347, %348 : vector<16x1xf32>
    %350 = vector.broadcast %342 : vector<16x1xf32> to vector<16x32xf32>
    %351 = arith.subf %338, %350 : vector<16x32xf32>
    %cst_116 = arith.constant 9.99999996E-13 : f32
    %352 = vector.broadcast %cst_116 : f32 to vector<16x1xf32>
    %353 = arith.addf %349, %352 : vector<16x1xf32>
    %354 = math.rsqrt %353 : vector<16x1xf32>
    %355 = vector.broadcast %354 : vector<16x1xf32> to vector<16x32xf32>
    %356 = arith.mulf %351, %355 : vector<16x32xf32>
    %357 = vector.broadcast %210 : vector<1x32xf32> to vector<16x32xf32>
    %358 = arith.mulf %356, %357 : vector<16x32xf32>
    %359 = vector.broadcast %211 : vector<1x32xf32> to vector<16x32xf32>
    %360 = arith.addf %358, %359 : vector<16x32xf32>
    %c2 = arith.constant 2 : index
    %c0_117 = arith.constant 0 : index
    %c0_118 = arith.constant 0 : index
    %361 = vector.load %arg11[%c2, %c0_117, %c0_118] : memref<3x16x32xf32, #tpu.memory_space<vmem>>, vector<1x16x32xf32>
    %362 = vector.shape_cast %361 : vector<1x16x32xf32> to vector<16x32xf32>
    %363 = vector.shape_cast %360 : vector<16x32xf32> to vector<1x16x32xf32>
    tpu.vector_store %arg11[%c2, %c0_117, %c0_118], %363 {strides = array<i32>} : memref<3x16x32xf32, #tpu.memory_space<vmem>>, vector<1x16x32xf32>,
    %c0_119 = arith.constant 0 : index
    %c0_120 = arith.constant 0 : index
    %364 = vector.load %arg5[%c0_119, %c0_120] : memref<2x16xf32, #tpu.memory_space<vmem>>, vector<2x16xf32>
    %cst_121 = arith.constant dense<0.000000e+00> : vector<2x32xf32>
    %365 = tpu.matmul %364, %360, %cst_121 {dimension_numbers = #tpu.dot_dimension_numbers<[1], [0], [0], [1], [0, 0, 1, 1], [], []>} : vector<2x16xf32>, vector<16x32xf32>, vector<2x32xf32> -> vector<2x32xf32>
    %c0_122 = arith.constant 0 : index
    %c0_123 = arith.constant 0 : index
    %366 = vector.load %arg12[%c0_122, %c0_123] : memref<2x32xf32, #tpu.memory_space<vmem>>, vector<2x32xf32>
    tpu.vector_store %arg12[%c0_122, %c0_123], %365 {strides = array<i32>} : memref<2x32xf32, #tpu.memory_space<vmem>>, vector<2x32xf32>,
    return
  }
}

</mosaic_0001>

<bundles_post_ra>
// kernel: custom_encoder_forward.1
= control target key start
LH: loop header
LB: loop body
LE: loop exit
PB: predicated region body
PF: predicated region fallthrough
CT: control target
= control target key end

     0   :  { %v1917_v2 = vmov 0   ;;  %s2541_s0 = inlined_call_operand.vmem [shape: s32[16,1], index: 0, kind: input, shape index: {}]   ;;  %s2542_s1 = inlined_call_operand.vmem [shape: f32[64,32], index: 1, kind: input, shape index: {}]   ;;  %s2543_s2 = inlined_call_operand.vmem [shape: f32[8,32], index: 2, kind: input, shape index: {}]   ;;  %s2544_s3 = inlined_call_operand.vmem [shape: f32[2,32], index: 3, kind: input, shape index: {}]   ;;  %s2545_s4 = inlined_call_operand.vmem [shape: f32[16,16], index: 4, kind: input, shape index: {}]   ;;  %s2546_s5 = inlined_call_operand.vmem [shape: f32[2,16], index: 5, kind: input, shape index: {}]   ;;  %s2547_s6 = inlined_call_operand.vmem [shape: bf16[2,32,96], index: 6, kind: input, shape index: {}]   ;;  %s2548_s7 = inlined_call_operand.vmem [shape: bf16[2,32,32], index: 7, kind: input, shape index: {}]   ;;  %s2549_s8 = inlined_call_operand.vmem [shape: bf16[2,32,64], index: 8, kind: input, shape index: {}]   ;;  %s2550_s9 = inlined_call_operand.vmem [shape: bf16[2,64,32], index: 9, kind: input, shape index: {}]   ;;  %s2551_s10 = inlined_call_operand.vmem [shape: f32[2,8,128], index: 10, kind: input, shape index: {}]   ;;  %s2552_s11 = inlined_call_operand.vmem [shape: f32[3,16,32], index: 11, kind: output, shape index: {0}]   ;;  %s2553_s12 = inlined_call_operand.hbm [shape: f32[2,32], index: 12, kind: output, shape index: {1}]  }
   0x1   :  { %v42_v0 = vld [vmem:[%s2541_s0] sm:$0xff]  ;;  %v65_v1 = vld [vmem:[%s2542_s1 + $0x38] sm:$0xff]  ;;  %1764 = vset.pattern.permute.xlu0 %v1917_v2  ;;  %v64_v3 = vld [vmem:[%s2542_s1 + $0x30] sm:$0xff] }
   0x2   :  { %82 = vmatpush.msra.mxu0 %v65_v1  ;;  %47 = vperm.xlu0 %1764, %v42_v0   ;;  %v63_v4 = vld [vmem:[%s2542_s1 + $0x28] sm:$0xff] }
   0x4   :  { %83 = vmatpush.msra.mxu0 %v64_v3 }
   0x5   :  { %18 = vsyncpa [#allocation3], 0  ;;  %v62_v5 = vld [vmem:[%s2542_s1 + $0x20] sm:$0xff]  ;;  %v61_v6 = vld [vmem:[%s2542_s1 + $0x18] sm:$0xff]  ;;  %v44_v11 = vlaneseq  ;;  %vm67_vm0 = vcmask 523264   ;;  %v1918_v14 = vmov 0.0  }
   0x6   :  { %84 = vmatpush.msra.mxu0 %v63_v4  ;;  %v43_v7 = vld [vmem:[%s2541_s0 + $0x8] sm:$0xff]  ;;  %v60_v8 = vld [vmem:[%s2542_s1 + $0x10] sm:$0xff]  ;;  %v58_v10 = vld [vmem:[%s2542_s1] sm:$0xff]  ;;  %vm98_vm3 = vcmask 261120   ;;  %v1919_v25 = vmov 32.0   ;;  %s1920_s15 = smov 96  }
   0x7   :  { %v59_v9 = vld [vmem:[%s2542_s1 + $0x8] sm:$0xff]  ;;  %v45_v12 = vand.u32 127, %v44_v11  ;;  %v66_v18 = vld [vmem:[%s2543_s2] sm:$0xff]  ;;  %1795 = vrcp.f32 %v1919_v25  ;;  %vm205_vm11 = vcmask 64512   ;;  %vm226_vm12 = vcmask 130048   ;;  %s1921_s20 = smov 64  }
   0x8   :  { %85 = vmatpush.msra.mxu0 %v62_v5  ;;  %v1727_v42 = vld [vmem:[%s2547_s6 + $0x8] sm:$0xff]  ;;  %v1726_v44 = vld [vmem:[%s2547_s6] sm:$0xff]  ;;  %s1922_s21 = smov 120   ;;  %s1923_s22 = smov 80  }
   0x9   :  { %188 = vmatpush.bf16.msra.mxu1 %v1727_v42  ;;  %v97_v55 = vld [vmem:[%s2544_s3] sm:$0x3]  ;;  %s1924_s0 = smov 112   ;;  %s1925_s23 = smov 88  }
   0xa   :  { %86 = vmatpush.msra.mxu0 %v61_v6  ;;  %50 = vperm.xlu0 %1764, %v43_v7   ;;  %v150_v59 = vperm.slane %v97_v55, 0  ;;  %v153_v63 = vperm.slane %v97_v55, 1  ;;  %s1926_s1 = smov 72   ;;  %s1927_s2 = smov 104  }
   0xb   :  { %s1928_s24 = smov 56   ;;  %s1929_s25 = smov 48  }
   0xc   :  { %87 = vmatpush.msra.mxu0 %v60_v8  ;;  %s1930_s26 = smov 40   ;;  %s1931_s27 = smov 8  }
   0xd   :  { %v1796_v26 = vpop.eup %1795  ;;  %189 = vmatpush.bf16.msra.mxu1 %v1726_v44  ;;  %s1932_s3 = smov 16   ;;  %s1933_s28 = smov 24  }
   0xe   :  { %88 = vmatpush.msra.mxu0 %v59_v9  ;;  %v106_v27 = vmul.f32 32.0, %v1796_v26  ;;  %vm110_vm4 = vweird.f32 %v1796_v26  ;;  %s1934_s19 = smov [#allocation2]  }
   0xf   :  { %s1579_s29 = sshll.u32 %s1934_s19, 4  ;;  %s1580_s29 = int_to_ptr.vmem [resolvable:$true] %s1579_s29 }
  0x10   :  { %89 = vmatpush.msra.mxu0 %v58_v10  ;;  %v107_v28 = vsub.f32 1.0, %v106_v27  ;;  %v2074_v10 = vld [vmem:[%s2551_s10] sm:$0xff]  ;;  %v2094_v27 = vld [vmem:[%s2545_s4 + $0x8] sm:$0xff] }
  0x12   :  { %v108_v29 = vmul.f32 %v1796_v26, %v107_v28 }
  0x14   :  { %v109_v30 = vadd.f32 %v1796_v26, %v108_v29 }
  0x16   :  { %v2037_v31 = vsel %vm110_vm4, %v1796_v26, %v109_v30 }
  0x74   :  { %v48_v13 = vpop.permute.xlu0 %47 }
  0x75   :  { %vm52_vm1 = vcmp.eq.s32.totalorder %v48_v13, %v45_v12 }
  0x76   :  { %v1592_v15 = vsel %vm52_vm1, 1.0, %v1918_v14 }
  0x77   :  { %1594 = vmatmul.msk.f32.vlgmr.msra.gmra.mxu0 %vm67_vm0, %v1592_v15 }
  0x7c   :  { %v51_v16 = vpop.permute.xlu0 %50 }
  0x7d   :  { %vm53_vm2 = vcmp.eq.s32.totalorder %v51_v16, %v45_v12  ;;  %v166_v12 = vperm.slane %v2074_v10, 0 }
  0x7e   :  { %v1593_v17 = vsel %vm53_vm2, 1.0, %v1918_v14 }
  0x7f   :  { %1595 = vmatmul.msk.f32.gmra.mxu0 %vm67_vm0, %v1593_v17 }
  0xf4   :  { %v91_v19 = vpop.f32.mrf.mxu0 }
  0xf5   :  { %v92_v20 = vadd.f32 %v91_v19, %v66_v18 }
  0xf7   :  { %v99_v21 = vsel %vm98_vm3, %v92_v20, 0.0 }
  0xf8   :  { %100 = vadd.xlane.f32.xlu1 %v99_v21 }
  0xfc   :  { %v94_v22 = vpop.f32.mrf.mxu0 }
  0xfd   :  { %v95_v23 = vadd.f32 %v94_v22, %v66_v18 }
  0xff   :  { %v102_v24 = vsel %vm98_vm3, %v95_v23, 0.0 }
 0x100   :  { %103 = vadd.xlane.f32.xlu1 %v102_v24 }
 0x16b   :  { %v101_v32 = vpop.xlane.xlu1 %100 }
 0x16c   :  { %v112_v33 = vmul.f32 %v2037_v31, %v101_v32 }
 0x16e   :  { %v114_v34 = vsub.f32 %v92_v20, %v112_v33 }
 0x170   :  { %v116_v35 = vmul.f32 %v114_v34, %v114_v34 }
 0x172   :  { %v118_v36 = vsel %vm98_vm3, %v116_v35, 0.0 }
 0x173   :  { %119 = vadd.xlane.f32.xlu2 %v118_v36  ;;  %v104_v37 = vpop.xlane.xlu1 %103 }
 0x174   :  { %v113_v38 = vmul.f32 %v2037_v31, %v104_v37 }
 0x176   :  { %v115_v39 = vsub.f32 %v95_v23, %v113_v38  ;;  %v2087_v23 = vld [vmem:[%s2545_s4] sm:$0xff] }
 0x178   :  { %v117_v40 = vmul.f32 %v115_v39, %v115_v39 }
 0x17a   :  { %v121_v41 = vsel %vm98_vm3, %v117_v40, 0.0 }
 0x17b   :  { %122 = vadd.xlane.f32.xlu2 %v121_v41 }
 0x1e6   :  { %v120_v43 = vpop.xlane.xlu2 %119 }
 0x1e7   :  { %v124_v45 = vmul.f32 %v120_v43, %v2037_v31 }
 0x1e9   :  { %v126_v46 = vadd.f32 1e-12, %v124_v45 }
 0x1eb   :  { %1797 = vrsqrt.f32 %v126_v46  ;;  %vm134_vm6 = vweird.f32 %v126_v46 }
 0x1ee   :  { %v123_v47 = vpop.xlane.xlu2 %122 }
 0x1ef   :  { %v125_v48 = vmul.f32 %v123_v47, %v2037_v31 }
 0x1f1   :  { %v1798_v49 = vpop.eup %1797  ;;  %v127_v50 = vadd.f32 1e-12, %v125_v48 }
 0x1f2   :  { %v129_v51 = vmul.f32 %v1798_v49, %v126_v46  ;;  %vm135_vm5 = vweird.f32 %v1798_v49 }
 0x1f3   :  { %1799 = vrsqrt.f32 %v127_v50  ;;  %vm136_vm7 = vmor %vm134_vm6, %vm135_vm5  ;;  %vm144_vm9 = vweird.f32 %v127_v50 }
 0x1f4   :  { %v130_v52 = vmul.f32 %v1798_v49, %v129_v51 }
 0x1f6   :  { %v131_v53 = vmul.f32 0.5, %v130_v52 }
 0x1f8   :  { %v132_v54 = vsub.f32 1.5, %v131_v53 }
 0x1f9   :  { %v1800_v56 = vpop.eup %1799 }
 0x1fa   :  { %v133_v57 = vmul.f32 %v1798_v49, %v132_v54  ;;  %v139_v58 = vmul.f32 %v1800_v56, %v127_v50  ;;  %vm145_vm8 = vweird.f32 %v1800_v56 }
 0x1fb   :  { %vm146_vm10 = vmor %vm144_vm9, %vm145_vm8 }
 0x1fc   :  { %v137_v60 = vsel %vm136_vm7, %v1798_v49, %v133_v57  ;;  %v140_v61 = vmul.f32 %v1800_v56, %v139_v58 }
 0x1fd   :  { %v148_v62 = vmul.f32 %v137_v60, %v114_v34 }
 0x1fe   :  { %v141_v0 = vmul.f32 0.5, %v140_v61 }
 0x1ff   :  { %v151_v1 = vmul.f32 %v150_v59, %v148_v62 }
 0x200   :  { %v142_v2 = vsub.f32 1.5, %v141_v0 }
 0x201   :  { %v2054_v3 = vadd.f32 %v153_v63, %v151_v1 }
 0x202   :  { %v143_v4 = vmul.f32 %v1800_v56, %v142_v2 }
 0x203   :  { %156 = vst.msk [vmem:[%s2552_s11] sm:$0xff] %vm98_vm3, %v2054_v3 }
 0x204   :  { %v147_v5 = vsel %vm146_vm10, %v1800_v56, %v143_v4 }
 0x205   :  { %v149_v6 = vmul.f32 %v147_v5, %v115_v39 }
 0x207   :  { %v152_v7 = vmul.f32 %v150_v59, %v149_v6 }
 0x209   :  { %v2061_v8 = vadd.f32 %v153_v63, %v152_v7 }
 0x20b   :  { %157 = vst.msk [vmem:[%s2552_s11 + $0x8] sm:$0xff] %vm98_vm3, %v2061_v8  ;;  %v161_v9 = vpack.c.bf16 %v2061_v8, %v2054_v3 }
 0x20d   :  { %1604 = vmatmul.msk.bf16.vlgmr.msra.gmra.mxu1 %vm98_vm3, %v161_v9 }
 0x28a   :  { %v191_v11 = vpop.f32.mrf.mxu1 }
 0x28b   :  { %v192_v13 = vadd.f32 %v191_v11, %v166_v12 }
 0x28d   :  { %v196_v15 = vpack.c.bf16 %v192_v13, %v192_v13 }
 0x28f   :  { %v200_v18 = vunpack.c.l.b16 %v196_v15 }
 0x292   :  { %v193_v14 = vpop.f32.mrf.mxu1 }
 0x293   :  { %v194_v16 = vadd.f32 %v193_v14, %v166_v12 }
 0x295   :  { %v197_v17 = vpack.c.bf16 %v194_v16, %v194_v16 }
 0x297   :  { %v201_v19 = vunpack.c.l.b16 %v197_v17 }
 0x299   :  { %v2077_v20 = vpack.c.b16 %v201_v19, %v200_v18 }
 0x29b   :  { %203 = vrot.lane.b32.xlu0 %v2077_v20, %s1920_s15 }
 0x30d   :  { %v204_v21 = vpop.permute.xlu0 %203 }
 0x30e   :  { %v210_v22 = vsel %vm205_vm11, %v204_v21, 0 }
 0x30f   :  { %219 = vmatpush.bf16.xpose.msra.mxu2 %v210_v22 }
 0x316   :  { %1605 = vmatmul.msk.bf16.vlgmr.msra.gmra.mxu2 %vm205_vm11, %v2077_v20 }
 0x399   :  { %v221_v24 = vpop.f32.mrf.mxu2 }
 0x39a   :  { %v222_v25 = vadd.f32 %v221_v24, %v2087_v23 }
 0x39c   :  { %v227_v26 = vsel %vm226_vm12, %v222_v25, -inf }
 0x39d   :  { %228 = vmax.xlane.f32.xlu1 %v227_v26 }
 0x3a1   :  { %v223_v28 = vpop.f32.mrf.mxu2 }
 0x3a2   :  { %v224_v29 = vadd.f32 %v223_v28, %v2094_v27 }
 0x3a4   :  { %v230_v30 = vsel %vm226_vm12, %v224_v29, -inf }
 0x3a5   :  { %231 = vmax.xlane.f32.xlu2 %v230_v30 }
 0x3bd   :  { %276 = vrot.lane.b32.xlu2 %v2077_v20, %s1921_s20 }
 0x3c5   :  { %296 = vrot.lane.b32.xlu2 %v2077_v20, %s1922_s21 }
 0x3cd   :  { %391 = vrot.lane.b32.xlu2 %v2077_v20, %s1923_s22 }
 0x3d5   :  { %389 = vrot.lane.b32.xlu2 %v2077_v20, %s1924_s0 }
 0x410   :  { %v229_v32 = vpop.xlane.xlu1 %228 }
 0x411   :  { %v233_v33 = vsub.f32 %v222_v25, %v229_v32 }
 0x413   :  { %v235_v34 = vmul.f32 1.442695, %v233_v33 }
 0x415   :  { %1801 = vpow2.f32 %v235_v34 }
 0x418   :  { %v232_v35 = vpop.xlane.xlu2 %231 }
 0x419   :  { %v234_v36 = vsub.f32 %v224_v29, %v232_v35 }
 0x41b   :  { %v1802_v37 = vpop.eup %1801  ;;  %v237_v38 = vmul.f32 1.442695, %v234_v36 }
 0x41c   :  { %v239_v39 = vsel %vm226_vm12, %v1802_v37, 0.0 }
 0x41d   :  { %1803 = vpow2.f32 %v237_v38  ;;  %240 = vadd.xlane.f32.xlu0 %v239_v39 }
 0x420   :  { %v277_v40 = vpop.permute.xlu2 %276 }
 0x421   :  { %289 = vmatpush.bf16.msra.mxu3 %v277_v40 }
 0x423   :  { %v1804_v41 = vpop.eup %1803 }
 0x424   :  { %v242_v42 = vsel %vm226_vm12, %v1804_v41, 0.0 }
 0x425   :  { %243 = vadd.xlane.f32.xlu1 %v242_v42 }
 0x428   :  { %v297_v43 = vpop.permute.xlu2 %296 }
 0x430   :  { %v392_v44 = vpop.permute.xlu2 %391 }
 0x431   :  { %v397_v45 = vsel %vm205_vm11, %v392_v44, 0 }
 0x432   :  { %406 = vmatpush.bf16.xpose.msrb.mxu2 %v397_v45 }
 0x438   :  { %v390_v46 = vpop.permute.xlu2 %389 }
 0x439   :  { %1609 = vmatmul.msk.bf16.vlgmr.msrb.gmra.mxu2 %vm205_vm11, %v390_v46 }
 0x43e   :  { %298 = vrot.lane.b32.xlu1 %v2077_v20, %s1925_s23 }
 0x446   :  { %484 = vrot.lane.b32.xlu1 %v2077_v20, %s1926_s1 }
 0x44e   :  { %482 = vrot.lane.b32.xlu1 %v2077_v20, %s1927_s2 }
 0x490   :  { %v241_v47 = vpop.xlane.xlu0 %240 }
 0x491   :  { %1805 = vrcp.f32 %v241_v47  ;;  %v256_v56 = vand.u32 2147483648, %v241_v47  ;;  %vm250_vm14 = vweird.f32 %v241_v47  ;;  %v254_v57 = vand.u32 2147483647, %v241_v47 }
 0x493   :  { %v257_v63 = vor.u32 1.1754944e-38, %v256_v56  ;;  %vm255_vm2 = vcmp.eq.f32.partialorder %v254_v57, 8.507059e+37 }
 0x497   :  { %v1806_v48 = vpop.eup %1805 }
 0x498   :  { %v246_v49 = vmul.f32 %v1806_v48, %v241_v47  ;;  %v244_v50 = vpop.xlane.xlu1 %243  ;;  %vm251_vm13 = vweird.f32 %v1806_v48 }
 0x499   :  { %1807 = vrcp.f32 %v244_v50  ;;  %vm252_vm15 = vmor %vm250_vm14, %vm251_vm13  ;;  %v271_v59 = vand.u32 2147483648, %v244_v50  ;;  %v269_v61 = vand.u32 2147483647, %v244_v50  ;;  %vm265_vm4 = vweird.f32 %v244_v50 }
 0x49a   :  { %v247_v51 = vsub.f32 1.0, %v246_v49 }
 0x49b   :  { %v272_v1 = vor.u32 1.1754944e-38, %v271_v59  ;;  %vm270_vm6 = vcmp.eq.f32.partialorder %v269_v61, 8.507059e+37 }
 0x49c   :  { %v248_v52 = vmul.f32 %v1806_v48, %v247_v51 }
 0x49e   :  { %v249_v54 = vadd.f32 %v1806_v48, %v248_v52 }
 0x49f   :  { %v1808_v53 = vpop.eup %1807 }
 0x4a0   :  { %v261_v55 = vmul.f32 %v1808_v53, %v244_v50  ;;  %vm266_vm1 = vweird.f32 %v1808_v53  ;;  %v253_v62 = vsel %vm252_vm15, %v1806_v48, %v249_v54 }
 0x4a1   :  { %vm267_vm5 = vmor %vm265_vm4, %vm266_vm1  ;;  %v258_v2 = vsel %vm255_vm2, %v257_v63, %v253_v62 }
 0x4a2   :  { %v262_v58 = vsub.f32 1.0, %v261_v55  ;;  %v259_v6 = vmul.f32 %v1802_v37, %v258_v2 }
 0x4a4   :  { %v263_v60 = vmul.f32 %v1808_v53, %v262_v58 }
 0x4a6   :  { %v264_v0 = vadd.f32 %v1808_v53, %v263_v60 }
 0x4a8   :  { %v268_v4 = vsel %vm267_vm5, %v1808_v53, %v264_v0 }
 0x4a9   :  { %v273_v5 = vsel %vm270_vm6, %v272_v1, %v268_v4 }
 0x4aa   :  { %v274_v7 = vmul.f32 %v1804_v41, %v273_v5 }
 0x4ac   :  { %v275_v9 = vpack.c.bf16 %v274_v7, %v259_v6 }
 0x4ae   :  { %1606 = vmatmul.msk.bf16.vlgmr.msra.gmra.mxu3 %vm226_vm12, %v275_v9 }
 0x4b0   :  { %v299_v11 = vpop.permute.xlu1 %298 }
 0x4b1   :  { %v304_v12 = vsel %vm205_vm11, %v299_v11, 0 }
 0x4b2   :  { %313 = vmatpush.bf16.xpose.msrb.mxu3 %v304_v12 }
 0x4b8   :  { %v485_v13 = vpop.permute.xlu1 %484 }
 0x4b9   :  { %v490_v14 = vsel %vm205_vm11, %v485_v13, 0 }
 0x4ba   :  { %499 = vmatpush.bf16.xpose.msra.mxu3 %v490_v14 }
 0x4bc   :  { %v408_v15 = vpop.f32.mrf.mxu2 }
 0x4bd   :  { %v409_v16 = vadd.f32 %v408_v15, %v2087_v23 }
 0x4be   :  { %1607 = vmatmul.msk.bf16.vlgmr.msrb.gmra.mxu3 %vm205_vm11, %v297_v43 }
 0x4bf   :  { %v413_v17 = vsel %vm226_vm12, %v409_v16, -inf }
 0x4c0   :  { %414 = vmax.xlane.f32.xlu1 %v413_v17  ;;  %v483_v18 = vpop.permute.xlu1 %482 }
 0x4c4   :  { %v410_v29 = vpop.f32.mrf.mxu2 }
 0x4c5   :  { %v411_v32 = vadd.f32 %v410_v29, %v2094_v27 }
 0x4c7   :  { %v416_v36 = vsel %vm226_vm12, %v411_v32, -inf }
 0x4ce   :  { %1611 = vmatmul.msk.bf16.vlgmr.msra.gmra.mxu3 %vm205_vm11, %v483_v18 }
 0x531   :  { %v2123_v19 = vpop.f32.mrf.mxu3 }
 0x533   :  { %v415_v22 = vpop.xlane.xlu1 %414 }
 0x534   :  { %v419_v26 = vsub.f32 %v409_v16, %v415_v22 }
 0x536   :  { %v421_v30 = vmul.f32 1.442695, %v419_v26 }
 0x538   :  { %1809 = vpow2.f32 %v421_v30 }
 0x539   :  { %v2125_v21 = vpop.f32.mrf.mxu3 }
 0x53e   :  { %v2133_v37 = vpop.eup %1809 }
 0x53f   :  { %v425_v38 = vsel %vm226_vm12, %v2133_v37, 0.0 }
 0x541   :  { %v315_v24 = vpop.f32.mrf.mxu3 }
 0x542   :  { %v316_v25 = vadd.f32 %v315_v24, %v2087_v23 }
 0x544   :  { %v320_v28 = vsel %vm226_vm12, %v316_v25, -inf }
 0x545   :  { %321 = vmax.xlane.f32.xlu0 %v320_v28 }
 0x549   :  { %v317_v33 = vpop.f32.mrf.mxu3 }
 0x54a   :  { %v318_v34 = vadd.f32 %v317_v33, %v2094_v27 }
 0x54c   :  { %v323_v35 = vsel %vm226_vm12, %v318_v34, -inf }
 0x54d   :  { %324 = vmax.xlane.f32.xlu2 %v323_v35  ;;  %417 = vmax.xlane.f32.xlu0 %v416_v36 }
 0x551   :  { %v501_v44 = vpop.f32.mrf.mxu3 }
 0x552   :  { %v502_v46 = vadd.f32 %v501_v44, %v2087_v23 }
 0x554   :  { %v506_v48 = vsel %vm226_vm12, %v502_v46, -inf }
 0x555   :  { %426 = vadd.xlane.f32.xlu2 %v425_v38 }
 0x559   :  { %v503_v49 = vpop.f32.mrf.mxu3 }
 0x55a   :  { %v504_v51 = vadd.f32 %v503_v49, %v2094_v27 }
 0x55c   :  { %v509_v54 = vsel %vm226_vm12, %v504_v51, -inf }
 0x5b8   :  { %v322_v39 = vpop.xlane.xlu0 %321 }
 0x5b9   :  { %v326_v47 = vsub.f32 %v316_v25, %v322_v39 }
 0x5bb   :  { %v328_v50 = vmul.f32 1.442695, %v326_v47 }
 0x5c0   :  { %v418_v40 = vpop.xlane.xlu0 %417  ;;  %v325_v52 = vpop.xlane.xlu2 %324 }
 0x5c1   :  { %v420_v41 = vsub.f32 %v411_v32, %v418_v40  ;;  %v327_v53 = vsub.f32 %v318_v34, %v325_v52 }
 0x5c3   :  { %v423_v42 = vmul.f32 1.442695, %v420_v41  ;;  %v330_v55 = vmul.f32 1.442695, %v327_v53 }
 0x5c5   :  { %1811 = vpow2.f32 %v423_v42 }
 0x5c6   :  { %1813 = vpow2.f32 %v328_v50 }
 0x5c7   :  { %1815 = vpow2.f32 %v330_v55 }
 0x5c8   :  { %v427_v41 = vpop.xlane.xlu2 %426 }
 0x5c9   :  { %vm436_vm6 = vweird.f32 %v427_v41 }
 0x5cb   :  { %v2137_v43 = vpop.eup %1811 }
 0x5cc   :  { %v428_v45 = vsel %vm226_vm12, %v2137_v43, 0.0  ;;  %v1814_v56 = vpop.eup %1813 }
 0x5cd   :  { %429 = vadd.xlane.f32.xlu0 %v428_v45  ;;  %v332_v57 = vsel %vm226_vm12, %v1814_v56, 0.0  ;;  %v1816_v23 = vpop.eup %1815 }
 0x5ce   :  { %v335_v58 = vsel %vm226_vm12, %v1816_v23, 0.0 }
 0x5d5   :  { %507 = vmax.xlane.f32.xlu0 %v506_v48 }
 0x5dd   :  { %510 = vmax.xlane.f32.xlu0 %v509_v54 }
 0x5e5   :  { %333 = vadd.xlane.f32.xlu0 %v332_v57 }
 0x5ed   :  { %336 = vadd.xlane.f32.xlu0 %v335_v58 }
 0x601   :  { %369 = vrot.lane.b32.xlu0 %v2077_v20, %s1928_s24 }
 0x640   :  { %v2149_v27 = vpop.xlane.xlu0 %429 }
 0x641   :  { %vm451_vm5 = vweird.f32 %v2149_v27  ;;  %v455_v58 = vand.u32 2147483647, %v2149_v27 }
 0x648   :  { %v508_v59 = vpop.xlane.xlu0 %507 }
 0x649   :  { %v512_v60 = vsub.f32 %v502_v46, %v508_v59 }
 0x64b   :  { %v514_v61 = vmul.f32 1.442695, %v512_v60  ;;  %v440_v60 = vand.u32 2147483647, %v427_v41 }
 0x64d   :  { %1817 = vpow2.f32 %v514_v61  ;;  %v442_v61 = vand.u32 2147483648, %v427_v41 }
 0x650   :  { %v511_v62 = vpop.xlane.xlu0 %510 }
 0x651   :  { %v513_v63 = vsub.f32 %v504_v51, %v511_v62 }
 0x653   :  { %v2151_v0 = vpop.eup %1817  ;;  %v516_v1 = vmul.f32 1.442695, %v513_v63 }
 0x654   :  { %v518_v2 = vsel %vm226_vm12, %v2151_v0, 0.0 }
 0x655   :  { %1819 = vpow2.f32 %v516_v1  ;;  %519 = vadd.xlane.f32.xlu1 %v518_v2 }
 0x658   :  { %v334_v4 = vpop.xlane.xlu0 %333 }
 0x659   :  { %1821 = vrcp.f32 %v334_v4  ;;  %v349_v17 = vand.u32 2147483648, %v334_v4  ;;  %vm343_vm8 = vweird.f32 %v334_v4  ;;  %v347_v18 = vand.u32 2147483647, %v334_v4 }
 0x65b   :  { %v2155_v5 = vpop.eup %1819  ;;  %v350_v29 = vor.u32 1.1754944e-38, %v349_v17  ;;  %vm348_vm13 = vcmp.eq.f32.partialorder %v347_v18, 8.507059e+37 }
 0x65c   :  { %v521_v6 = vsel %vm226_vm12, %v2155_v5, 0.0 }
 0x65d   :  { %522 = vadd.xlane.f32.xlu2 %v521_v6 }
 0x65f   :  { %v1822_v7 = vpop.eup %1821 }
 0x660   :  { %v339_v9 = vmul.f32 %v1822_v7, %v334_v4  ;;  %v337_v11 = vpop.xlane.xlu0 %336  ;;  %vm344_vm7 = vweird.f32 %v1822_v7 }
 0x661   :  { %1823 = vrcp.f32 %v337_v11  ;;  %vm345_vm9 = vmor %vm343_vm8, %vm344_vm7  ;;  %v364_v24 = vand.u32 2147483648, %v337_v11  ;;  %v362_v28 = vand.u32 2147483647, %v337_v11  ;;  %vm358_vm14 = vweird.f32 %v337_v11 }
 0x662   :  { %v340_v12 = vsub.f32 1.0, %v339_v9  ;;  %1825 = vrcp.f32 %v2149_v27 }
 0x663   :  { %v365_v32 = vor.u32 1.1754944e-38, %v364_v24  ;;  %vm363_vm1 = vcmp.eq.f32.partialorder %v362_v28, 8.507059e+37  ;;  %1827 = vrcp.f32 %v427_v41 }
 0x664   :  { %v341_v13 = vmul.f32 %v1822_v7, %v340_v12 }
 0x666   :  { %v342_v15 = vadd.f32 %v1822_v7, %v341_v13  ;;  %v443_v13 = vor.u32 1.1754944e-38, %v442_v61 }
 0x667   :  { %v1824_v14 = vpop.eup %1823 }
 0x668   :  { %v354_v16 = vmul.f32 %v1824_v14, %v337_v11  ;;  %v346_v25 = vsel %vm345_vm9, %v1822_v7, %v342_v15  ;;  %vm359_vm10 = vweird.f32 %v1824_v14  ;;  %v1826_v42 = vpop.eup %1825 }
 0x669   :  { %vm360_vm15 = vmor %vm358_vm14, %vm359_vm10  ;;  %v351_v33 = vsel %vm348_vm13, %v350_v29, %v346_v25  ;;  %v1828_v44 = vpop.eup %1827  ;;  %v447_v45 = vmul.f32 %v1826_v42, %v2149_v27  ;;  %vm452_vm2 = vweird.f32 %v1826_v42  ;;  %vm456_vm10 = vcmp.eq.f32.partialorder %v455_v58, 8.507059e+37 }
 0x66a   :  { %v355_v22 = vsub.f32 1.0, %v354_v16  ;;  %v352_v36 = vmul.f32 %v1814_v56, %v351_v33  ;;  %v432_v47 = vmul.f32 %v1828_v44, %v427_v41  ;;  %vm437_vm4 = vweird.f32 %v1828_v44  ;;  %vm2169_vm7 = vmor %vm451_vm5, %vm452_vm2 }
 0x66b   :  { %v448_v48 = vsub.f32 1.0, %v447_v45  ;;  %vm2173_vm8 = vmor %vm436_vm6, %vm437_vm4  ;;  %vm441_vm14 = vcmp.eq.f32.partialorder %v440_v60, 8.507059e+37 }
 0x66c   :  { %v356_v26 = vmul.f32 %v1824_v14, %v355_v22  ;;  %v433_v49 = vsub.f32 1.0, %v432_v47  ;;  %v1728_v47 = vld [vmem:[%s2548_s7] sm:$0xff] }
 0x66d   :  { %v449_v51 = vmul.f32 %v1826_v42, %v448_v48 }
 0x66e   :  { %v357_v30 = vadd.f32 %v1824_v14, %v356_v26  ;;  %462 = vrot.lane.b32.xlu1 %v2077_v20, %s1929_s25 }
 0x66f   :  { %v450_v55 = vadd.f32 %v1826_v42, %v449_v51 }
 0x670   :  { %v361_v34 = vsel %vm360_vm15, %v1824_v14, %v357_v30 }
 0x671   :  { %v366_v35 = vsel %vm363_vm1, %v365_v32, %v361_v34  ;;  %v454_v1 = vsel %vm2169_vm7, %v1826_v42, %v450_v55  ;;  %vm603_vm7 = vcmask 195584  }
 0x672   :  { %v367_v38 = vmul.f32 %v1816_v23, %v366_v35  ;;  %v457_v23 = vand.u32 2147483648, %v2149_v27 }
 0x673   :  { %v370_v39 = vpop.permute.xlu0 %369 }
 0x674   :  { %382 = vmatpush.bf16.msrb.mxu1 %v370_v39  ;;  %v368_v40 = vpack.c.bf16 %v367_v38, %v352_v36  ;;  %v458_v7 = vor.u32 1.1754944e-38, %v457_v23 }
 0x675   :  { %555 = vrot.lane.b32.xlu2 %v2077_v20, %s1930_s26  ;;  %v434_v20 = vmul.f32 %v1828_v44, %v433_v49 }
 0x676   :  { %v459_v15 = vsel %vm456_vm10, %v458_v7, %v454_v1 }
 0x677   :  { %1608 = vmatmul.msk.bf16.vlgmr.msrb.gmra.mxu1 %vm226_vm12, %v368_v40  ;;  %v435_v57 = vadd.f32 %v1828_v44, %v434_v20  ;;  %v460_v26 = vmul.f32 %v2137_v43, %v459_v15 }
 0x679   :  { %v439_v27 = vsel %vm2173_vm8, %v1828_v44, %v435_v57 }
 0x67a   :  { %v444_v24 = vsel %vm441_vm14, %v443_v13, %v439_v27 }
 0x67b   :  { %v445_v33 = vmul.f32 %v2133_v37, %v444_v24  ;;  %v1730_v24 = vld [vmem:[%s2549_s8] sm:$0xff] }
 0x67d   :  { %v461_v38 = vpack.c.bf16 %v460_v26, %v445_v33 }
 0x6c8   :  { %v520_v46 = vpop.xlane.xlu1 %519 }
 0x6c9   :  { %1829 = vrcp.f32 %v520_v46  ;;  %v535_v9 = vand.u32 2147483648, %v520_v46  ;;  %vm529_vm13 = vweird.f32 %v520_v46  ;;  %v533_v11 = vand.u32 2147483647, %v520_v46 }
 0x6cb   :  { %v536_v22 = vor.u32 1.1754944e-38, %v535_v9  ;;  %vm534_vm2 = vcmp.eq.f32.partialorder %v533_v11, 8.507059e+37 }
 0x6cf   :  { %v1830_v50 = vpop.eup %1829 }
 0x6d0   :  { %v525_v52 = vmul.f32 %v1830_v50, %v520_v46  ;;  %v523_v53 = vpop.xlane.xlu2 %522  ;;  %vm530_vm9 = vweird.f32 %v1830_v50 }
 0x6d1   :  { %1831 = vrcp.f32 %v523_v53  ;;  %vm531_vm15 = vmor %vm529_vm13, %vm530_vm9  ;;  %v550_v14 = vand.u32 2147483648, %v523_v53  ;;  %v548_v18 = vand.u32 2147483647, %v523_v53  ;;  %vm544_vm4 = vweird.f32 %v523_v53 }
 0x6d2   :  { %v526_v54 = vsub.f32 1.0, %v525_v52 }
 0x6d3   :  { %v551_v29 = vor.u32 1.1754944e-38, %v550_v14  ;;  %vm549_vm6 = vcmp.eq.f32.partialorder %v548_v18, 8.507059e+37 }
 0x6d4   :  { %v527_v56 = vmul.f32 %v1830_v50, %v526_v54 }
 0x6d6   :  { %v528_v2 = vadd.f32 %v1830_v50, %v527_v56 }
 0x6d7   :  { %v1832_v59 = vpop.eup %1831 }
 0x6d8   :  { %v540_v4 = vmul.f32 %v1832_v59, %v523_v53  ;;  %v556_v6 = vpop.permute.xlu2 %555  ;;  %v532_v16 = vsel %vm531_vm15, %v1830_v50, %v528_v2  ;;  %vm545_vm1 = vweird.f32 %v1832_v59 }
 0x6d9   :  { %568 = vmatpush.bf16.msra.mxu1 %v556_v6  ;;  %v537_v28 = vsel %vm534_vm2, %v536_v22, %v532_v16  ;;  %vm546_vm5 = vmor %vm544_vm4, %vm545_vm1 }
 0x6da   :  { %v541_v12 = vsub.f32 1.0, %v540_v4  ;;  %v538_v35 = vmul.f32 %v2151_v0, %v537_v28 }
 0x6dc   :  { %v542_v17 = vmul.f32 %v1832_v59, %v541_v12 }
 0x6de   :  { %v543_v25 = vadd.f32 %v1832_v59, %v542_v17 }
 0x6e0   :  { %v547_v30 = vsel %vm546_vm5, %v1832_v59, %v543_v25  ;;  %v463_v32 = vpop.permute.xlu1 %462 }
 0x6e1   :  { %v552_v34 = vsel %vm549_vm6, %v551_v29, %v547_v30  ;;  %475 = vmatpush.bf16.msrb.mxu0 %v463_v32 }
 0x6e2   :  { %v553_v36 = vmul.f32 %v2155_v5, %v552_v34  ;;  %v1729_v5 = vld [vmem:[%s2548_s7 + $0x8] sm:$0xff] }
 0x6e3   :  { %633 = vmatpush.bf16.msra.mxu2 %v1729_v5 }
 0x6e4   :  { %1610 = vmatmul.msk.bf16.vlgmr.msrb.gmra.mxu0 %vm226_vm12, %v461_v38  ;;  %v554_v39 = vpack.c.bf16 %v553_v36, %v538_v35 }
 0x6e6   :  { %1612 = vmatmul.msk.bf16.vlgmr.msra.gmra.mxu1 %vm226_vm12, %v554_v39 }
 0x6e7   :  { %634 = vmatpush.bf16.msra.mxu2 %v1728_v47 }
 0x6f4   :  { %v384_v43 = vpop.f32.mrf.mxu1 }
 0x6fc   :  { %v386_v40 = vpop.f32.mrf.mxu1 }
 0x6fd   :  { %v1770_v41 = vpack.i.bf16 %v386_v40, %v384_v43 }
 0x6ff   :  { %1771 = vrot.lane.b32.xlu0 %v1770_v41, %s1931_s27 }
 0x761   :  { %v477_v42 = vpop.f32.mrf.mxu0 }
 0x763   :  { %v570_v37 = vpop.f32.mrf.mxu1 }
 0x769   :  { %v479_v44 = vpop.f32.mrf.mxu0 }
 0x76a   :  { %v1765_v45 = vpack.i.bf16 %v479_v44, %v477_v42 }
 0x76b   :  { %v572_v46 = vpop.f32.mrf.mxu1 }
 0x76c   :  { %v1775_v0 = vpack.i.bf16 %v572_v46, %v570_v37  ;;  %1766 = vrot.lane.b32.xlu1 %v1765_v45, %s1932_s3  ;;  %v687_v37 = vperm.slane %v2074_v10, 2 }
 0x76e   :  { %1776 = vrot.lane.b32.xlu0 %v1775_v0, %s1933_s28  ;;  %v690_v0 = vperm.slane %v2074_v10, 3 }
 0x771   :  { %v1772_v48 = vpop.permute.xlu0 %1771 }
 0x772   :  { %v1774_v49 = vunpack.i.h.bf16 %v1772_v48  ;;  %v1773_v50 = vunpack.i.l.bf16 %v1772_v48 }
 0x774   :  { %v600_v20 = vsel %vm205_vm11, %v2125_v21, %v1774_v49  ;;  %v599_v54 = vsel %vm205_vm11, %v2123_v19, %v1773_v50  ;;  %v611_v21 = vperm.slane %v2074_v10, 1 }
 0x7de   :  { %v1767_v51 = vpop.permute.xlu1 %1766 }
 0x7df   :  { %v1769_v52 = vunpack.i.h.bf16 %v1767_v51  ;;  %v1768_v53 = vunpack.i.l.bf16 %v1767_v51 }
 0x7e0   :  { %v1777_v55 = vpop.permute.xlu0 %1776 }
 0x7e1   :  { %v602_v56 = vsel %vm226_vm12, %v600_v20, %v1769_v52  ;;  %v601_v57 = vsel %vm226_vm12, %v599_v54, %v1768_v53  ;;  %v1779_v23 = vunpack.i.h.bf16 %v1777_v55  ;;  %v1778_v58 = vunpack.i.l.bf16 %v1777_v55  ;;  %v1735_v52 = vld [vmem:[%s2550_s9 + $0x18] sm:$0xff]  ;;  %v1734_v53 = vld [vmem:[%s2550_s9 + $0x10] sm:$0xff]  ;;  %v1733_v20 = vld [vmem:[%s2550_s9 + $0x8] sm:$0xff] }
 0x7e2   :  { %787 = vmatpush.bf16.msrb.mxu3 %v1735_v52  ;;  %v698_v54 = vperm.slane %v2074_v10, 4  ;;  %v1732_v55 = vld [vmem:[%s2550_s9] sm:$0xff] }
 0x7e3   :  { %v604_v59 = vsel %vm603_vm7, %v601_v57, %v1778_v58  ;;  %v605_v60 = vsel %vm603_vm7, %v602_v56, %v1779_v23 }
 0x7e4   :  { %v606_v61 = vpack.c.bf16 %v605_v60, %v604_v59 }
 0x7e6   :  { %1621 = vmatmul.msk.bf16.vlgmr.msra.gmra.mxu2 %vm98_vm3, %v606_v61  ;;  %788 = vmatpush.bf16.msrb.mxu3 %v1734_v53  ;;  %v843_v53 = vperm.slane %v2074_v10, 6 }
 0x7ea   :  { %789 = vmatpush.bf16.msrb.mxu3 %v1733_v20 }
 0x7ee   :  { %790 = vmatpush.bf16.msrb.mxu3 %v1732_v55  ;;  %v846_v55 = vperm.slane %v2074_v10, 7 }
 0x869   :  { %v636_v62 = vpop.f32.mrf.mxu2 }
 0x86a   :  { %v637_v63 = vadd.f32 %v636_v62, %v611_v21 }
 0x86c   :  { %v641_v19 = vadd.f32 %v637_v63, %v2054_v3 }
 0x86e   :  { %v643_v1 = vsel %vm98_vm3, %v641_v19, 0.0 }
 0x86f   :  { %644 = vadd.xlane.f32.xlu2 %v643_v1 }
 0x871   :  { %v638_v2 = vpop.f32.mrf.mxu2 }
 0x872   :  { %v639_v4 = vadd.f32 %v638_v2, %v611_v21 }
 0x874   :  { %v642_v6 = vadd.f32 %v639_v4, %v2061_v8  ;;  %v1731_v8 = vld [vmem:[%s2549_s8 + $0x8] sm:$0xff] }
 0x875   :  { %720 = vmatpush.bf16.msra.mxu0 %v1731_v8 }
 0x876   :  { %v646_v27 = vsel %vm98_vm3, %v642_v6, 0.0 }
 0x877   :  { %647 = vadd.xlane.f32.xlu1 %v646_v27 }
 0x879   :  { %721 = vmatpush.bf16.msra.mxu0 %v1730_v24 }
 0x8e2   :  { %v645_v7 = vpop.xlane.xlu2 %644 }
 0x8e3   :  { %v649_v9 = vmul.f32 %v645_v7, %v2037_v31 }
 0x8e5   :  { %v651_v11 = vsub.f32 %v641_v19, %v649_v9 }
 0x8e7   :  { %v653_v12 = vmul.f32 %v651_v11, %v651_v11 }
 0x8e9   :  { %v655_v13 = vsel %vm98_vm3, %v653_v12, 0.0 }
 0x8ea   :  { %v648_v14 = vpop.xlane.xlu1 %647  ;;  %656 = vadd.xlane.f32.xlu0 %v655_v13 }
 0x8eb   :  { %v650_v3 = vmul.f32 %v648_v14, %v2037_v31 }
 0x8ed   :  { %v652_v15 = vsub.f32 %v642_v6, %v650_v3 }
 0x8ef   :  { %v654_v16 = vmul.f32 %v652_v15, %v652_v15 }
 0x8f1   :  { %v658_v17 = vsel %vm98_vm3, %v654_v16, 0.0 }
 0x8f2   :  { %659 = vadd.xlane.f32.xlu2 %v658_v17 }
 0x95d   :  { %v657_v18 = vpop.xlane.xlu0 %656 }
 0x95e   :  { %v661_v22 = vmul.f32 %v657_v18, %v2037_v31 }
 0x960   :  { %v663_v25 = vadd.f32 1e-12, %v661_v22 }
 0x962   :  { %1833 = vrsqrt.f32 %v663_v25  ;;  %vm671_vm9 = vweird.f32 %v663_v25 }
 0x965   :  { %v660_v26 = vpop.xlane.xlu2 %659 }
 0x966   :  { %v662_v28 = vmul.f32 %v660_v26, %v2037_v31 }
 0x968   :  { %v1834_v29 = vpop.eup %1833  ;;  %v664_v30 = vadd.f32 1e-12, %v662_v28 }
 0x969   :  { %v666_v32 = vmul.f32 %v1834_v29, %v663_v25  ;;  %vm672_vm8 = vweird.f32 %v1834_v29 }
 0x96a   :  { %1835 = vrsqrt.f32 %v664_v30  ;;  %vm673_vm10 = vmor %vm671_vm9, %vm672_vm8  ;;  %vm681_vm14 = vweird.f32 %v664_v30 }
 0x96b   :  { %v667_v33 = vmul.f32 %v1834_v29, %v666_v32 }
 0x96d   :  { %v668_v34 = vmul.f32 0.5, %v667_v33 }
 0x96f   :  { %v669_v35 = vsub.f32 1.5, %v668_v34 }
 0x970   :  { %v1836_v36 = vpop.eup %1835 }
 0x971   :  { %v670_v38 = vmul.f32 %v1834_v29, %v669_v35  ;;  %v676_v39 = vmul.f32 %v1836_v36, %v664_v30  ;;  %vm682_vm13 = vweird.f32 %v1836_v36 }
 0x972   :  { %vm683_vm15 = vmor %vm681_vm14, %vm682_vm13 }
 0x973   :  { %v677_v43 = vmul.f32 %v1836_v36, %v676_v39  ;;  %v674_v40 = vsel %vm673_vm10, %v1834_v29, %v670_v38 }
 0x974   :  { %v685_v44 = vmul.f32 %v674_v40, %v651_v11 }
 0x975   :  { %v678_v41 = vmul.f32 0.5, %v677_v43  ;;  %v1737_v43 = vld [vmem:[%s2547_s6 + $0x18] sm:$0xff] }
 0x976   :  { %v688_v5 = vmul.f32 %v687_v37, %v685_v44  ;;  %882 = vmatpush.bf16.msrb.mxu1 %v1737_v43 }
 0x977   :  { %v679_v42 = vsub.f32 1.5, %v678_v41 }
 0x978   :  { %v691_v49 = vadd.f32 %v690_v0, %v688_v5 }
 0x979   :  { %v680_v45 = vmul.f32 %v1836_v36, %v679_v42  ;;  %v1736_v42 = vld [vmem:[%s2547_s6 + $0x10] sm:$0xff] }
 0x97a   :  { %883 = vmatpush.bf16.msrb.mxu1 %v1736_v42 }
 0x97b   :  { %v684_v46 = vsel %vm683_vm15, %v1836_v36, %v680_v45 }
 0x97c   :  { %v686_v47 = vmul.f32 %v684_v46, %v652_v15  ;;  %v755_v15 = vperm.slane %v2074_v10, 5 }
 0x97e   :  { %v689_v48 = vmul.f32 %v687_v37, %v686_v47 }
 0x980   :  { %v692_v50 = vadd.f32 %v690_v0, %v689_v48 }
 0x982   :  { %v693_v51 = vpack.c.bf16 %v692_v50, %v691_v49 }
 0x984   :  { %1630 = vmatmul.msk.bf16.vlgmr.msra.gmra.mxu0 %vm98_vm3, %v693_v51 }
 0xa01   :  { %v723_v56 = vpop.f32.mrf.mxu0 }
 0xa02   :  { %v724_v57 = vadd.f32 %v723_v56, %v698_v54 }
 0xa04   :  { %v728_v23 = vmul.f32 %v724_v57, %v724_v57 }
 0xa06   :  { %v730_v58 = vmul.f32 %v728_v23, %v724_v57 }
 0xa08   :  { %v732_v59 = vmul.f32 0.044715, %v730_v58 }
 0xa09   :  { %v725_v60 = vpop.f32.mrf.mxu0 }
 0xa0a   :  { %v734_v61 = vadd.f32 %v732_v59, %v724_v57  ;;  %v726_v21 = vadd.f32 %v725_v60, %v698_v54 }
 0xa0c   :  { %v736_v62 = vmul.f32 0.7978846, %v734_v61  ;;  %v729_v63 = vmul.f32 %v726_v21, %v726_v21 }
 0xa0e   :  { %v731_v19 = vmul.f32 %v729_v63, %v726_v21  ;;  %1837 = vtanh.f32 %v736_v62 }
 0xa10   :  { %v733_v1 = vmul.f32 0.044715, %v731_v19  ;;  %v2276_v19 = vld [vmem:[%s2551_s10 + $0x8] sm:$0xff] }
 0xa12   :  { %v735_v2 = vadd.f32 %v733_v1, %v726_v21 }
 0xa14   :  { %v737_v4 = vmul.f32 0.7978846, %v735_v2  ;;  %v1838_v6 = vpop.eup %1837  ;;  %v860_v2 = vperm.slane %v2276_v19, 0 }
 0xa15   :  { %v740_v27 = vadd.f32 1.0, %v1838_v6 }
 0xa16   :  { %1839 = vtanh.f32 %v737_v4 }
 0xa17   :  { %v742_v9 = vmul.f32 0.5, %v740_v27 }
 0xa19   :  { %v744_v13 = vmul.f32 %v742_v9, %v724_v57 }
 0xa1c   :  { %v1840_v7 = vpop.eup %1839 }
 0xa1d   :  { %v741_v11 = vadd.f32 1.0, %v1840_v7 }
 0xa1f   :  { %v743_v12 = vmul.f32 0.5, %v741_v11 }
 0xa21   :  { %v745_v14 = vmul.f32 %v743_v12, %v726_v21 }
 0xa23   :  { %v746_v3 = vpack.c.bf16 %v745_v14, %v744_v13 }
 0xa25   :  { %1647 = vmatmul.msk.bf16.vlgmr.msrb.gmra.mxu3 %vm67_vm0, %v746_v3 }
 0xaa8   :  { %v792_v16 = vpop.f32.mrf.mxu3 }
 0xaa9   :  { %v793_v17 = vadd.f32 %v792_v16, %v755_v15 }
 0xaab   :  { %v797_v8 = vadd.f32 %v793_v17, %v691_v49 }
 0xaad   :  { %v799_v18 = vsel %vm98_vm3, %v797_v8, 0.0 }
 0xaae   :  { %800 = vadd.xlane.f32.xlu1 %v799_v18 }
 0xab0   :  { %v794_v22 = vpop.f32.mrf.mxu3 }
 0xab1   :  { %v795_v24 = vadd.f32 %v794_v22, %v755_v15 }
 0xab3   :  { %v798_v25 = vadd.f32 %v795_v24, %v692_v50 }
 0xab5   :  { %v802_v26 = vsel %vm98_vm3, %v798_v25, 0.0 }
 0xab6   :  { %803 = vadd.xlane.f32.xlu0 %v802_v26 }
 0xb21   :  { %v801_v28 = vpop.xlane.xlu1 %800 }
 0xb22   :  { %v805_v29 = vmul.f32 %v801_v28, %v2037_v31 }
 0xb24   :  { %v807_v30 = vsub.f32 %v797_v8, %v805_v29  ;;  %v1889_v29 = vld [vmem:[%s2545_s4] sm:$0xff] }
 0xb26   :  { %v809_v32 = vmul.f32 %v807_v30, %v807_v30 }
 0xb28   :  { %v811_v33 = vsel %vm98_vm3, %v809_v32, 0.0 }
 0xb29   :  { %v804_v34 = vpop.xlane.xlu0 %803  ;;  %812 = vadd.xlane.f32.xlu2 %v811_v33 }
 0xb2a   :  { %v806_v35 = vmul.f32 %v804_v34, %v2037_v31 }
 0xb2c   :  { %v808_v36 = vsub.f32 %v798_v25, %v806_v35 }
 0xb2e   :  { %v810_v38 = vmul.f32 %v808_v36, %v808_v36 }
 0xb30   :  { %v814_v39 = vsel %vm98_vm3, %v810_v38, 0.0  ;;  %v1890_v38 = vld [vmem:[%s2545_s4 + $0x8] sm:$0xff] }
 0xb31   :  { %815 = vadd.xlane.f32.xlu1 %v814_v39 }
 0xb9c   :  { %v813_v40 = vpop.xlane.xlu2 %812 }
 0xb9d   :  { %v817_v41 = vmul.f32 %v813_v40, %v2037_v31 }
 0xb9f   :  { %v819_v37 = vadd.f32 1e-12, %v817_v41 }
 0xba1   :  { %1841 = vrsqrt.f32 %v819_v37  ;;  %vm827_vm2 = vweird.f32 %v819_v37 }
 0xba4   :  { %v816_v44 = vpop.xlane.xlu1 %815 }
 0xba5   :  { %v818_v45 = vmul.f32 %v816_v44, %v2037_v31 }
 0xba7   :  { %v1842_v46 = vpop.eup %1841  ;;  %v820_v0 = vadd.f32 1e-12, %v818_v45 }
 0xba8   :  { %v822_v5 = vmul.f32 %v1842_v46, %v819_v37  ;;  %vm828_vm1 = vweird.f32 %v1842_v46 }
 0xba9   :  { %1843 = vrsqrt.f32 %v820_v0  ;;  %vm829_vm4 = vmor %vm827_vm2, %vm828_vm1  ;;  %vm837_vm6 = vweird.f32 %v820_v0 }
 0xbaa   :  { %v823_v47 = vmul.f32 %v1842_v46, %v822_v5 }
 0xbac   :  { %v824_v48 = vmul.f32 0.5, %v823_v47 }
 0xbae   :  { %v825_v49 = vsub.f32 1.5, %v824_v48 }
 0xbaf   :  { %v1844_v50 = vpop.eup %1843 }
 0xbb0   :  { %v826_v51 = vmul.f32 %v1842_v46, %v825_v49  ;;  %v832_v52 = vmul.f32 %v1844_v50, %v820_v0  ;;  %vm838_vm5 = vweird.f32 %v1844_v50 }
 0xbb1   :  { %vm839_vm8 = vmor %vm837_vm6, %vm838_vm5 }
 0xbb2   :  { %v830_v20 = vsel %vm829_vm4, %v1842_v46, %v826_v51  ;;  %v833_v54 = vmul.f32 %v1844_v50, %v832_v52 }
 0xbb3   :  { %v841_v56 = vmul.f32 %v830_v20, %v807_v30 }
 0xbb4   :  { %v834_v57 = vmul.f32 0.5, %v833_v54 }
 0xbb5   :  { %v844_v23 = vmul.f32 %v843_v53, %v841_v56 }
 0xbb6   :  { %v835_v58 = vsub.f32 1.5, %v834_v57 }
 0xbb7   :  { %v2256_v59 = vadd.f32 %v846_v55, %v844_v23 }
 0xbb8   :  { %v836_v60 = vmul.f32 %v1844_v50, %v835_v58 }
 0xbb9   :  { %1648 = vst.msk [vmem:[%s2552_s11 + $0x10] sm:$0xff] %vm98_vm3, %v2256_v59 }
 0xbba   :  { %v840_v61 = vsel %vm839_vm8, %v1844_v50, %v836_v60 }
 0xbbb   :  { %v842_v21 = vmul.f32 %v840_v61, %v808_v36 }
 0xbbd   :  { %v845_v62 = vmul.f32 %v843_v53, %v842_v21 }
 0xbbf   :  { %v2263_v10 = vadd.f32 %v846_v55, %v845_v62 }
 0xbc1   :  { %1649 = vst.msk [vmem:[%s2552_s11 + $0x18] sm:$0xff] %vm98_vm3, %v2263_v10  ;;  %v854_v63 = vpack.c.bf16 %v2263_v10, %v2256_v59 }
 0xbc3   :  { %1663 = vmatmul.msk.bf16.vlgmr.msrb.gmra.mxu1 %vm98_vm3, %v854_v63 }
 0xc40   :  { %v885_v1 = vpop.f32.mrf.mxu1 }
 0xc41   :  { %v886_v4 = vadd.f32 %v885_v1, %v860_v2 }
 0xc43   :  { %v890_v27 = vpack.c.bf16 %v886_v4, %v886_v4 }
 0xc45   :  { %v894_v11 = vunpack.c.l.b16 %v890_v27 }
 0xc48   :  { %v887_v6 = vpop.f32.mrf.mxu1 }
 0xc49   :  { %v888_v7 = vadd.f32 %v887_v6, %v860_v2 }
 0xc4b   :  { %v891_v9 = vpack.c.bf16 %v888_v7, %v888_v7 }
 0xc4d   :  { %v895_v12 = vunpack.c.l.b16 %v891_v9 }
 0xc4f   :  { %v2279_v13 = vpack.c.b16 %v895_v12, %v894_v11 }
 0xc51   :  { %988 = vrot.lane.b32.xlu1 %v2279_v13, %s1922_s21  ;;  %990 = vrot.lane.b32.xlu2 %v2279_v13, %s1925_s23  ;;  %s1581_s21 = sshll.u32 %s2553_s12, 4  ;;  %s1582_s21 = int_to_ptr.hbm [resolvable:$true] %s1581_s21 }
 0xc52   :  { %897 = vrot.lane.b32.xlu0 %v2279_v13, %s1920_s15 }
 0xc59   :  { %1174 = vrot.lane.b32.xlu1 %v2279_v13, %s1927_s2  ;;  %1176 = vrot.lane.b32.xlu2 %v2279_v13, %s1926_s1 }
 0xc5a   :  { %1083 = vrot.lane.b32.xlu0 %v2279_v13, %s1923_s22 }
 0xc62   :  { %1081 = vrot.lane.b32.xlu0 %v2279_v13, %s1924_s0 }
 0xcab   :  { %v991_v14 = vpop.permute.xlu2 %990 }
 0xcac   :  { %v996_v3 = vsel %vm205_vm11, %v991_v14, 0 }
 0xcad   :  { %1005 = vmatpush.bf16.xpose.msra.mxu3 %v996_v3 }
 0xcb3   :  { %v1177_v15 = vpop.permute.xlu2 %1176 }
 0xcb4   :  { %v1182_v16 = vsel %vm205_vm11, %v1177_v15, 0 }
 0xcb5   :  { %1191 = vmatpush.bf16.xpose.msrb.mxu3 %v1182_v16 }
 0xcc3   :  { %v989_v17 = vpop.permute.xlu1 %988 }
 0xcc4   :  { %v898_v8 = vpop.permute.xlu0 %897  ;;  %1666 = vmatmul.msk.bf16.vlgmr.msra.gmra.mxu3 %vm205_vm11, %v989_v17 }
 0xcc5   :  { %v903_v18 = vsel %vm205_vm11, %v898_v8, 0 }
 0xcc6   :  { %912 = vmatpush.bf16.xpose.msrb.mxu2 %v903_v18 }
 0xccb   :  { %v1175_v25 = vpop.permute.xlu1 %1174 }
 0xccc   :  { %v1084_v22 = vpop.permute.xlu0 %1083 }
 0xccd   :  { %v1089_v24 = vsel %vm205_vm11, %v1084_v22, 0  ;;  %1664 = vmatmul.msk.bf16.vlgmr.msrb.gmra.mxu2 %vm205_vm11, %v2279_v13 }
 0xcce   :  { %1098 = vmatpush.bf16.xpose.msra.mxu2 %v1089_v24 }
 0xcd4   :  { %1670 = vmatmul.msk.bf16.vlgmr.msrb.gmra.mxu3 %vm205_vm11, %v1175_v25  ;;  %v1082_v26 = vpop.permute.xlu0 %1081 }
 0xcdd   :  { %1668 = vmatmul.msk.bf16.vlgmr.msra.gmra.mxu2 %vm205_vm11, %v1082_v26 }
 0xd47   :  { %v1007_v28 = vpop.f32.mrf.mxu3 }
 0xd48   :  { %v1008_v30 = vadd.f32 %v1889_v29, %v1007_v28 }
 0xd4a   :  { %v1012_v32 = vsel %vm226_vm12, %v1008_v30, -inf }
 0xd4b   :  { %1013 = vmax.xlane.f32.xlu1 %v1012_v32 }
 0xd4f   :  { %v1009_v34 = vpop.f32.mrf.mxu3 }
 0xd50   :  { %v914_v33 = vpop.f32.mrf.mxu2  ;;  %v1010_v39 = vadd.f32 %v1890_v38, %v1009_v34 }
 0xd51   :  { %v915_v35 = vadd.f32 %v1889_v29, %v914_v33 }
 0xd52   :  { %v1015_v37 = vsel %vm226_vm12, %v1010_v39, -inf }
 0xd53   :  { %v919_v36 = vsel %vm226_vm12, %v915_v35, -inf }
 0xd54   :  { %920 = vmax.xlane.f32.xlu2 %v919_v36 }
 0xd57   :  { %v1193_v41 = vpop.f32.mrf.mxu3 }
 0xd58   :  { %v916_v43 = vpop.f32.mrf.mxu2  ;;  %v1194_v44 = vadd.f32 %v1889_v29, %v1193_v41 }
 0xd59   :  { %v917_v40 = vadd.f32 %v1890_v38, %v916_v43 }
 0xd5a   :  { %v1198_v0 = vsel %vm226_vm12, %v1194_v44, -inf }
 0xd5b   :  { %v922_v42 = vsel %vm226_vm12, %v917_v40, -inf }
 0xd5c   :  { %923 = vmax.xlane.f32.xlu0 %v922_v42  ;;  %1016 = vmax.xlane.f32.xlu2 %v1015_v37 }
 0xd5f   :  { %v1195_v47 = vpop.f32.mrf.mxu3 }
 0xd60   :  { %v1100_v45 = vpop.f32.mrf.mxu2  ;;  %v1196_v48 = vadd.f32 %v1890_v38, %v1195_v47 }
 0xd61   :  { %v1101_v46 = vadd.f32 %v1889_v29, %v1100_v45 }
 0xd62   :  { %v1201_v52 = vsel %vm226_vm12, %v1196_v48, -inf }
 0xd63   :  { %v1105_v5 = vsel %vm226_vm12, %v1101_v46, -inf }
 0xd64   :  { %1199 = vmax.xlane.f32.xlu2 %v1198_v0  ;;  %1106 = vmax.xlane.f32.xlu0 %v1105_v5 }
 0xd68   :  { %v1102_v49 = vpop.f32.mrf.mxu2 }
 0xd69   :  { %v1103_v50 = vadd.f32 %v1890_v38, %v1102_v49 }
 0xd6b   :  { %v1108_v51 = vsel %vm226_vm12, %v1103_v50, -inf }
 0xd6c   :  { %1109 = vmax.xlane.f32.xlu1 %v1108_v51  ;;  %1202 = vmax.xlane.f32.xlu0 %v1201_v52 }
 0xd80   :  { %968 = vrot.lane.b32.xlu0 %v2279_v13, %s1921_s20 }
 0xdbe   :  { %v1014_v53 = vpop.xlane.xlu1 %1013 }
 0xdbf   :  { %v1018_v20 = vsub.f32 %v1008_v30, %v1014_v53 }
 0xdc1   :  { %v1020_v54 = vmul.f32 1.442695, %v1018_v20 }
 0xdc3   :  { %1845 = vpow2.f32 %v1020_v54 }
 0xdc7   :  { %v921_v55 = vpop.xlane.xlu2 %920 }
 0xdc8   :  { %v925_v56 = vsub.f32 %v915_v35, %v921_v55 }
 0xdc9   :  { %v2320_v57 = vpop.eup %1845 }
 0xdca   :  { %v927_v23 = vmul.f32 1.442695, %v925_v56  ;;  %v1024_v58 = vsel %vm226_vm12, %v2320_v57, 0.0 }
 0xdcb   :  { %1025 = vadd.xlane.f32.xlu0 %v1024_v58 }
 0xdcc   :  { %1847 = vpow2.f32 %v927_v23 }
 0xdcf   :  { %v1017_v60 = vpop.xlane.xlu2 %1016  ;;  %v924_v61 = vpop.xlane.xlu0 %923 }
 0xdd0   :  { %v1019_v21 = vsub.f32 %v1010_v39, %v1017_v60  ;;  %v926_v62 = vsub.f32 %v917_v40, %v924_v61 }
 0xdd2   :  { %v2324_v63 = vpop.eup %1847  ;;  %v1022_v1 = vmul.f32 1.442695, %v1019_v21  ;;  %v929_v2 = vmul.f32 1.442695, %v926_v62 }
 0xdd3   :  { %v931_v4 = vsel %vm226_vm12, %v2324_v63, 0.0 }
 0xdd4   :  { %1849 = vpow2.f32 %v1022_v1  ;;  %932 = vadd.xlane.f32.xlu1 %v931_v4 }
 0xdd5   :  { %1851 = vpow2.f32 %v929_v2 }
 0xdd7   :  { %v1200_v6 = vpop.xlane.xlu2 %1199  ;;  %v1107_v27 = vpop.xlane.xlu0 %1106 }
 0xdd8   :  { %v1204_v7 = vsub.f32 %v1194_v44, %v1200_v6  ;;  %v1111_v9 = vsub.f32 %v1101_v46, %v1107_v27 }
 0xdda   :  { %v2328_v11 = vpop.eup %1849  ;;  %v1206_v12 = vmul.f32 1.442695, %v1204_v7  ;;  %v1113_v14 = vmul.f32 1.442695, %v1111_v9 }
 0xddb   :  { %v2330_v3 = vpop.eup %1851  ;;  %v1027_v15 = vsel %vm226_vm12, %v2328_v11, 0.0 }
 0xddc   :  { %1853 = vpow2.f32 %v1206_v12  ;;  %1028 = vadd.xlane.f32.xlu1 %v1027_v15  ;;  %v934_v16 = vsel %vm226_vm12, %v2330_v3, 0.0 }
 0xddd   :  { %1855 = vpow2.f32 %v1113_v14  ;;  %935 = vadd.xlane.f32.xlu2 %v934_v16 }
 0xddf   :  { %v1110_v17 = vpop.xlane.xlu1 %1109  ;;  %v1203_v8 = vpop.xlane.xlu0 %1202 }
 0xde0   :  { %v1112_v18 = vsub.f32 %v1103_v50, %v1110_v17  ;;  %v1205_v22 = vsub.f32 %v1196_v48, %v1203_v8 }
 0xde2   :  { %v2336_v24 = vpop.eup %1853  ;;  %v1115_v25 = vmul.f32 1.442695, %v1112_v18  ;;  %v1208_v26 = vmul.f32 1.442695, %v1205_v22 }
 0xde3   :  { %v2338_v28 = vpop.eup %1855  ;;  %v1210_v29 = vsel %vm226_vm12, %v2336_v24, 0.0 }
 0xde4   :  { %1857 = vpow2.f32 %v1115_v25  ;;  %1211 = vadd.xlane.f32.xlu1 %v1210_v29  ;;  %v1117_v30 = vsel %vm226_vm12, %v2338_v28, 0.0 }
 0xde5   :  { %1859 = vpow2.f32 %v1208_v26  ;;  %1118 = vadd.xlane.f32.xlu2 %v1117_v30 }
 0xdea   :  { %v2344_v32 = vpop.eup %1857 }
 0xdeb   :  { %v2346_v33 = vpop.eup %1859  ;;  %v1120_v34 = vsel %vm226_vm12, %v2344_v32, 0.0 }
 0xdec   :  { %1121 = vadd.xlane.f32.xlu0 %v1120_v34  ;;  %v1213_v35 = vsel %vm226_vm12, %v2346_v33, 0.0 }
 0xded   :  { %1214 = vadd.xlane.f32.xlu2 %v1213_v35 }
 0xdf2   :  { %v969_v36 = vpop.permute.xlu0 %968 }
 0xdf3   :  { %981 = vmatpush.bf16.msrb.mxu0 %v969_v36 }
 0xdfd   :  { %1061 = vrot.lane.b32.xlu1 %v2279_v13, %s1928_s24 }
 0xe00   :  { %1247 = vrot.lane.b32.xlu0 %v2279_v13, %s1930_s26 }
 0xe05   :  { %1154 = vrot.lane.b32.xlu2 %v2279_v13, %s1929_s25 }
 0xe3e   :  { %v2358_v39 = vpop.xlane.xlu0 %1025 }
 0xe3f   :  { %v1039_v14 = vand.u32 2147483647, %v2358_v39  ;;  %v1041_v17 = vand.u32 2147483648, %v2358_v39 }
 0xe47   :  { %v933_v38 = vpop.xlane.xlu1 %932 }
 0xe48   :  { %1861 = vrcp.f32 %v933_v38  ;;  %v948_v50 = vand.u32 2147483648, %v933_v38  ;;  %vm942_vm10 = vweird.f32 %v933_v38  ;;  %v946_v51 = vand.u32 2147483647, %v933_v38 }
 0xe49   :  { %1863 = vrcp.f32 %v2358_v39 }
 0xe4a   :  { %v949_v60 = vor.u32 1.1754944e-38, %v948_v50  ;;  %vm947_vm15 = vcmp.eq.f32.partialorder %v946_v51, 8.507059e+37 }
 0xe4e   :  { %v1862_v43 = vpop.eup %1861 }
 0xe4f   :  { %v938_v40 = vmul.f32 %v1862_v43, %v933_v38  ;;  %v2361_v41 = vpop.xlane.xlu1 %1028  ;;  %v2364_v44 = vpop.eup %1863  ;;  %vm943_vm9 = vweird.f32 %v1862_v43  ;;  %v1042_v38 = vor.u32 1.1754944e-38, %v1041_v17 }
 0xe50   :  { %1865 = vrcp.f32 %v2361_v41  ;;  %v936_v42 = vpop.xlane.xlu2 %935  ;;  %v1031_v0 = vmul.f32 %v2364_v44, %v2358_v39  ;;  %vm944_vm13 = vmor %vm942_vm10, %vm943_vm9  ;;  %vm1036_vm6 = vweird.f32 %v2364_v44  ;;  %v1056_v25 = vand.u32 2147483648, %v2361_v41 }
 0xe51   :  { %v939_v37 = vsub.f32 1.0, %v938_v40  ;;  %1867 = vrcp.f32 %v936_v42  ;;  %v963_v54 = vand.u32 2147483648, %v936_v42  ;;  %v961_v23 = vand.u32 2147483647, %v936_v42 }
 0xe52   :  { %v1032_v53 = vsub.f32 1.0, %v1031_v0  ;;  %vm957_vm1 = vweird.f32 %v936_v42  ;;  %vm1050_vm8 = vweird.f32 %v2361_v41  ;;  %vm1035_vm9 = vweird.f32 %v2358_v39 }
 0xe53   :  { %v940_v45 = vmul.f32 %v1862_v43, %v939_v37  ;;  %v964_v1 = vor.u32 1.1754944e-38, %v963_v54  ;;  %vm962_vm4 = vcmp.eq.f32.partialorder %v961_v23, 8.507059e+37 }
 0xe54   :  { %v1033_v6 = vmul.f32 %v2364_v44, %v1032_v53 }
 0xe55   :  { %v941_v47 = vadd.f32 %v1862_v43, %v940_v45 }
 0xe56   :  { %v2366_v46 = vpop.eup %1865  ;;  %v1034_v22 = vadd.f32 %v2364_v44, %v1033_v6 }
 0xe57   :  { %v1868_v13 = vpop.eup %1867  ;;  %v1046_v5 = vmul.f32 %v2366_v46, %v2361_v41  ;;  %v945_v55 = vsel %vm944_vm13, %v1862_v43, %v941_v47  ;;  %v2375_v58 = vpop.xlane.xlu1 %1211  ;;  %vm1051_vm5 = vweird.f32 %v2366_v46  ;;  %vm2410_vm13 = vmor %vm1035_vm9, %vm1036_vm6 }
 0xe58   :  { %v953_v48 = vmul.f32 %v1868_v13, %v936_v42  ;;  %v2372_v49 = vpop.xlane.xlu2 %1118  ;;  %vm958_vm14 = vweird.f32 %v1868_v13  ;;  %v950_v21 = vsel %vm947_vm15, %v949_v60, %v945_v55  ;;  %vm2405_vm10 = vmor %vm1050_vm8, %vm1051_vm5  ;;  %v1057_v42 = vor.u32 1.1754944e-38, %v1056_v25 }
 0xe59   :  { %1869 = vrcp.f32 %v2372_v49  ;;  %v1047_v20 = vsub.f32 1.0, %v1046_v5  ;;  %vm959_vm2 = vmor %vm957_vm1, %vm958_vm14  ;;  %v951_v15 = vmul.f32 %v2324_v63, %v950_v21  ;;  %v1054_v63 = vand.u32 2147483647, %v2361_v41 }
 0xe5a   :  { %v954_v52 = vsub.f32 1.0, %v953_v48  ;;  %1871 = vrcp.f32 %v2375_v58  ;;  %vm2414_vm14 = vcmp.eq.f32.partialorder %v1039_v14, 8.507059e+37  ;;  %v1038_v41 = vsel %vm2410_vm13, %v2364_v44, %v1034_v22 }
 0xe5b   :  { %v1048_v62 = vmul.f32 %v2366_v46, %v1047_v20  ;;  %vm1055_vm1 = vcmp.eq.f32.partialorder %v1054_v63, 8.507059e+37  ;;  %v1132_v44 = vand.u32 2147483647, %v2372_v49  ;;  %v1043_v48 = vsel %vm2414_vm14, %v1042_v38, %v1038_v41  ;;  %v1738_v41 = vld [vmem:[%s2548_s7 + $0x10] sm:$0xff] }
 0xe5c   :  { %v955_v56 = vmul.f32 %v1868_v13, %v954_v52  ;;  %v1044_v23 = vmul.f32 %v2320_v57, %v1043_v48 }
 0xe5d   :  { %v1049_v8 = vadd.f32 %v2366_v46, %v1048_v62  ;;  %vm1133_vm6 = vcmp.eq.f32.partialorder %v1132_v44, 8.507059e+37 }
 0xe5e   :  { %v956_v61 = vadd.f32 %v1868_v13, %v955_v56 }
 0xe5f   :  { %v2379_v2 = vpop.xlane.xlu0 %1121  ;;  %v2381_v4 = vpop.eup %1869  ;;  %v1053_v43 = vsel %vm2405_vm10, %v2366_v46, %v1049_v8  ;;  %v1134_v46 = vand.u32 2147483648, %v2372_v49 }
 0xe60   :  { %v960_v27 = vsel %vm959_vm2, %v1868_v13, %v956_v61  ;;  %v2384_v7 = vpop.xlane.xlu2 %1214  ;;  %1873 = vrcp.f32 %v2379_v2  ;;  %v1124_v12 = vmul.f32 %v2381_v4, %v2372_v49  ;;  %v2399_v29 = vpop.eup %1871  ;;  %vm1129_vm15 = vweird.f32 %v2381_v4 }
 0xe61   :  { %v965_v9 = vsel %vm962_vm4, %v964_v1, %v960_v27  ;;  %1875 = vrcp.f32 %v2384_v7  ;;  %v1217_v13 = vmul.f32 %v2399_v29, %v2375_v58  ;;  %v1058_v5 = vsel %vm1055_vm1, %v1057_v42, %v1053_v43 }
 0xe62   :  { %v966_v16 = vmul.f32 %v2330_v3, %v965_v9  ;;  %v1125_v18 = vsub.f32 1.0, %v1124_v12  ;;  %vm1128_vm2 = vweird.f32 %v2372_v49  ;;  %v1149_v51 = vand.u32 2147483648, %v2379_v2 }
 0xe63   :  { %vm1130_vm4 = vmor %vm1128_vm2, %vm1129_vm15  ;;  %v1147_v20 = vand.u32 2147483647, %v2379_v2  ;;  %v1059_v54 = vmul.f32 %v2328_v11, %v1058_v5  ;;  %v1218_v55 = vsub.f32 1.0, %v1217_v13  ;;  %v1135_v56 = vor.u32 1.1754944e-38, %v1134_v46 }
 0xe64   :  { %v967_v26 = vpack.c.bf16 %v966_v16, %v951_v15  ;;  %v1126_v3 = vmul.f32 %v2381_v4, %v1125_v18  ;;  %vm1143_vm8 = vweird.f32 %v2379_v2  ;;  %v1150_v21 = vor.u32 1.1754944e-38, %v1149_v51 }
 0xe65   :  { %vm1148_vm10 = vcmp.eq.f32.partialorder %v1147_v20, 8.507059e+37  ;;  %v1060_v6 = vpack.c.bf16 %v1059_v54, %v1044_v23  ;;  %v1242_v12 = vand.u32 2147483648, %v2384_v7  ;;  %vm1222_vm14 = vweird.f32 %v2399_v29 }
 0xe66   :  { %v1874_v30 = vpop.eup %1873  ;;  %1665 = vmatmul.msk.bf16.vlgmr.msrb.gmra.mxu0 %vm226_vm12, %v967_v26  ;;  %v1127_v37 = vadd.f32 %v2381_v4, %v1126_v3  ;;  %vm1236_vm15 = vweird.f32 %v2384_v7  ;;  %vm1221_vm2 = vweird.f32 %v2375_v58  ;;  %v1225_v16 = vand.u32 2147483647, %v2375_v58 }
 0xe67   :  { %v1139_v39 = vmul.f32 %v1874_v30, %v2379_v2  ;;  %v2422_v40 = vpop.eup %1875  ;;  %vm1144_vm5 = vweird.f32 %v1874_v30  ;;  %v1243_v8 = vor.u32 1.1754944e-38, %v1242_v12 }
 0xe68   :  { %v1155_v45 = vpop.permute.xlu2 %1154  ;;  %v1232_v0 = vmul.f32 %v2422_v40, %v2384_v7  ;;  %v1131_v52 = vsel %vm1130_vm4, %v2381_v4, %v1127_v37  ;;  %vm1145_vm9 = vmor %vm1143_vm8, %vm1144_vm5  ;;  %v1219_v4 = vmul.f32 %v2399_v29, %v1218_v55  ;;  %vm1237_vm13 = vweird.f32 %v2422_v40 }
 0xe69   :  { %1167 = vmatpush.bf16.msra.mxu0 %v1155_v45  ;;  %v1140_v47 = vsub.f32 1.0, %v1139_v39  ;;  %v1136_v60 = vsel %vm1133_vm6, %v1135_v56, %v1131_v52  ;;  %vm1238_vm1 = vmor %vm1236_vm15, %vm1237_vm13  ;;  %vm1226_vm6 = vcmp.eq.f32.partialorder %v1225_v16, 8.507059e+37  ;;  %v1303_v55 = vperm.slane %v2276_v19, 1  ;;  %v1740_v16 = vld [vmem:[%s2549_s8 + $0x10] sm:$0xff] }
 0xe6a   :  { %v1233_v50 = vsub.f32 1.0, %v1232_v0  ;;  %v1137_v27 = vmul.f32 %v2338_v28, %v1136_v60  ;;  %v1220_v15 = vadd.f32 %v2399_v29, %v1219_v4  ;;  %v1240_v28 = vand.u32 2147483647, %v2384_v7  ;;  %vm1223_vm4 = vmor %vm1221_vm2, %vm1222_vm14 }
 0xe6b   :  { %v1141_v53 = vmul.f32 %v1874_v30, %v1140_v47 }
 0xe6c   :  { %v1234_v61 = vmul.f32 %v2422_v40, %v1233_v50  ;;  %v1224_v18 = vsel %vm1223_vm4, %v2399_v29, %v1220_v15  ;;  %vm1241_vm5 = vcmp.eq.f32.partialorder %v1240_v28, 8.507059e+37  ;;  %v1741_v28 = vld [vmem:[%s2549_s8 + $0x18] sm:$0xff] }
 0xe6d   :  { %v1142_v49 = vadd.f32 %v1874_v30, %v1141_v53  ;;  %1413 = vmatpush.bf16.msrb.mxu0 %v1741_v28 }
 0xe6e   :  { %v1235_v57 = vadd.f32 %v2422_v40, %v1234_v61 }
 0xe6f   :  { %v1062_v62 = vpop.permute.xlu1 %1061  ;;  %v1146_v1 = vsel %vm1145_vm9, %v1874_v30, %v1142_v49 }
 0xe70   :  { %1074 = vmatpush.bf16.msra.mxu1 %v1062_v62  ;;  %v1151_v11 = vsel %vm1148_vm10, %v1150_v21, %v1146_v1  ;;  %v1239_v17 = vsel %vm1238_vm1, %v2422_v40, %v1235_v57 }
 0xe71   :  { %v1152_v9 = vmul.f32 %v2344_v32, %v1151_v11  ;;  %v1227_v32 = vand.u32 2147483648, %v2375_v58  ;;  %v1244_v25 = vsel %vm1241_vm5, %v1243_v8, %v1239_v17  ;;  %1414 = vmatpush.bf16.msrb.mxu0 %v1740_v16  ;;  %vm1570_vm5 = vcmask 254976  }
 0xe72   :  { %v1248_v2 = vpop.permute.xlu0 %1247  ;;  %v1245_v26 = vmul.f32 %v2346_v33, %v1244_v25 }
 0xe73   :  { %1667 = vmatmul.msk.bf16.vlgmr.msra.gmra.mxu1 %vm226_vm12, %v1060_v6  ;;  %v1153_v14 = vpack.c.bf16 %v1152_v9, %v1137_v27  ;;  %v1228_v22 = vor.u32 1.1754944e-38, %v1227_v32 }
 0xe74   :  { %1260 = vmatpush.bf16.msrb.mxu1 %v1248_v2 }
 0xe75   :  { %v1229_v7 = vsel %vm1226_vm6, %v1228_v22, %v1224_v18 }
 0xe76   :  { %1669 = vmatmul.msk.bf16.vlgmr.msra.gmra.mxu0 %vm226_vm12, %v1153_v14  ;;  %v1230_v63 = vmul.f32 %v2336_v24, %v1229_v7  ;;  %v1739_v24 = vld [vmem:[%s2548_s7 + $0x18] sm:$0xff] }
 0xe77   :  { %1325 = vmatpush.bf16.msrb.mxu2 %v1739_v24 }
 0xe78   :  { %v1246_v3 = vpack.c.bf16 %v1245_v26, %v1230_v63 }
 0xe7b   :  { %1326 = vmatpush.bf16.msrb.mxu2 %v1738_v41 }
 0xe83   :  { %1671 = vmatmul.msk.bf16.vlgmr.msrb.gmra.mxu1 %vm226_vm12, %v1246_v3 }
 0xee3   :  { %v983_v30 = vpop.f32.mrf.mxu0 }
 0xeeb   :  { %v985_v58 = vpop.f32.mrf.mxu0 }
 0xef0   :  { %v1076_v34 = vpop.f32.mrf.mxu1 }
 0xef3   :  { %v1169_v35 = vpop.f32.mrf.mxu0 }
 0xef8   :  { %v1078_v36 = vpop.f32.mrf.mxu1 }
 0xef9   :  { %v1780_v38 = vpack.i.bf16 %v1078_v36, %v1076_v34 }
 0xefb   :  { %v1171_v43 = vpop.f32.mrf.mxu0  ;;  %1781 = vrot.lane.b32.xlu0 %v1780_v38, %s1931_s27 }
 0xefc   :  { %v1785_v29 = vpack.i.bf16 %v1171_v43, %v1169_v35  ;;  %v1379_v43 = vperm.slane %v2276_v19, 2 }
 0xefe   :  { %1786 = vrot.lane.b32.xlu1 %v1785_v29, %s1932_s3 }
 0xf00   :  { %v1262_v39 = vpop.f32.mrf.mxu1 }
 0xf08   :  { %v1264_v40 = vpop.f32.mrf.mxu1 }
 0xf09   :  { %v1790_v33 = vpack.i.bf16 %v1264_v40, %v1262_v39 }
 0xf0b   :  { %1791 = vrot.lane.b32.xlu2 %v1790_v33, %s1933_s28  ;;  %v1382_v33 = vperm.slane %v2276_v19, 3 }
 0xf65   :  { %v1792_v13 = vpop.permute.xlu2 %1791 }
 0xf66   :  { %v1794_v48 = vunpack.i.h.bf16 %v1792_v13  ;;  %v1793_v50 = vunpack.i.l.bf16 %v1792_v13 }
 0xf6d   :  { %v1782_v42 = vpop.permute.xlu0 %1781 }
 0xf6e   :  { %v1784_v37 = vunpack.i.h.bf16 %v1782_v42  ;;  %v1783_v45 = vunpack.i.l.bf16 %v1782_v42 }
 0xf70   :  { %v1292_v46 = vsel %vm205_vm11, %v985_v58, %v1784_v37  ;;  %v1291_v0 = vsel %vm205_vm11, %v983_v30, %v1783_v45  ;;  %v1787_v5 = vpop.permute.xlu1 %1786 }
 0xf71   :  { %v1789_v44 = vunpack.i.h.bf16 %v1787_v5  ;;  %v1788_v47 = vunpack.i.l.bf16 %v1787_v5  ;;  %v1391_v5 = vperm.slane %v2276_v19, 4 }
 0xf73   :  { %v1293_v51 = vsel %vm226_vm12, %v1291_v0, %v1788_v47  ;;  %v1294_v52 = vsel %vm226_vm12, %v1292_v46, %v1789_v44  ;;  %v1745_v46 = vld [vmem:[%s2550_s9 + $0x38] sm:$0xff]  ;;  %v1744_v0 = vld [vmem:[%s2550_s9 + $0x30] sm:$0xff]  ;;  %v1743_v44 = vld [vmem:[%s2550_s9 + $0x28] sm:$0xff] }
 0xf74   :  { %v1295_v53 = vsel %vm603_vm7, %v1293_v51, %v1793_v50  ;;  %v1296_v20 = vsel %vm603_vm7, %v1294_v52, %v1794_v48  ;;  %1481 = vmatpush.bf16.msra.mxu3 %v1745_v46  ;;  %v1742_v50 = vld [vmem:[%s2550_s9 + $0x20] sm:$0xff] }
 0xf75   :  { %v1297_v54 = vpack.c.bf16 %v1296_v20, %v1295_v53 }
 0xf77   :  { %1684 = vmatmul.msk.bf16.vlgmr.msrb.gmra.mxu2 %vm98_vm3, %v1297_v54 }
 0xf78   :  { %1482 = vmatpush.bf16.msra.mxu3 %v1744_v0 }
 0xf7c   :  { %1483 = vmatpush.bf16.msra.mxu3 %v1743_v44 }
 0xf80   :  { %1484 = vmatpush.bf16.msra.mxu3 %v1742_v50 }
 0xffa   :  { %v1328_v56 = vpop.f32.mrf.mxu2 }
 0xffb   :  { %v1329_v49 = vadd.f32 %v1328_v56, %v1303_v55 }
 0xffd   :  { %v1333_v23 = vadd.f32 %v1329_v49, %v2256_v59 }
 0xfff   :  { %v1335_v60 = vsel %vm98_vm3, %v1333_v23, 0.0 }
0x1000   :  { %1336 = vadd.xlane.f32.xlu0 %v1335_v60 }
0x1002   :  { %v1330_v61 = vpop.f32.mrf.mxu2 }
0x1003   :  { %v1331_v21 = vadd.f32 %v1330_v61, %v1303_v55 }
0x1005   :  { %v1334_v62 = vadd.f32 %v1331_v21, %v2263_v10 }
0x1007   :  { %v1338_v1 = vsel %vm98_vm3, %v1334_v62, 0.0 }
0x1008   :  { %1339 = vadd.xlane.f32.xlu1 %v1338_v1 }
0x1073   :  { %v1337_v4 = vpop.xlane.xlu0 %1336 }
0x1074   :  { %v1341_v11 = vmul.f32 %v1337_v4, %v2037_v31 }
0x1076   :  { %v1343_v6 = vsub.f32 %v1333_v23, %v1341_v11 }
0x1078   :  { %v1345_v27 = vmul.f32 %v1343_v6, %v1343_v6 }
0x107a   :  { %v1347_v9 = vsel %vm98_vm3, %v1345_v27, 0.0 }
0x107b   :  { %v1340_v2 = vpop.xlane.xlu1 %1339  ;;  %1348 = vadd.xlane.f32.xlu2 %v1347_v9 }
0x107c   :  { %v1342_v59 = vmul.f32 %v1340_v2, %v2037_v31 }
0x107e   :  { %v1344_v57 = vsub.f32 %v1334_v62, %v1342_v59 }
0x1080   :  { %v1346_v12 = vmul.f32 %v1344_v57, %v1344_v57 }
0x1082   :  { %v1350_v14 = vsel %vm98_vm3, %v1346_v12, 0.0 }
0x1083   :  { %1351 = vadd.xlane.f32.xlu0 %v1350_v14 }
0x10ee   :  { %v1349_v10 = vpop.xlane.xlu2 %1348 }
0x10ef   :  { %v1353_v15 = vmul.f32 %v1349_v10, %v2037_v31 }
0x10f1   :  { %v1355_v32 = vadd.f32 1e-12, %v1353_v15 }
0x10f3   :  { %1877 = vrsqrt.f32 %v1355_v32  ;;  %vm1363_vm7 = vweird.f32 %v1355_v32 }
0x10f6   :  { %v1352_v17 = vpop.xlane.xlu0 %1351 }
0x10f7   :  { %v1354_v8 = vmul.f32 %v1352_v17, %v2037_v31 }
0x10f9   :  { %v1878_v18 = vpop.eup %1877  ;;  %v1356_v22 = vadd.f32 1e-12, %v1354_v8 }
0x10fa   :  { %v1358_v25 = vmul.f32 %v1878_v18, %v1355_v32  ;;  %vm1364_vm11 = vweird.f32 %v1878_v18 }
0x10fb   :  { %1879 = vrsqrt.f32 %v1356_v22  ;;  %vm1365_vm8 = vmor %vm1363_vm7, %vm1364_vm11  ;;  %vm1373_vm10 = vweird.f32 %v1356_v22 }
0x10fc   :  { %v1359_v7 = vmul.f32 %v1878_v18, %v1358_v25 }
0x10fe   :  { %v1360_v26 = vmul.f32 0.5, %v1359_v7 }
0x1100   :  { %v1361_v63 = vsub.f32 1.5, %v1360_v26 }
0x1101   :  { %v1880_v3 = vpop.eup %1879 }
0x1102   :  { %v1362_v30 = vmul.f32 %v1878_v18, %v1361_v63  ;;  %v1368_v58 = vmul.f32 %v1880_v3, %v1356_v22  ;;  %vm1374_vm9 = vweird.f32 %v1880_v3 }
0x1103   :  { %vm1375_vm13 = vmor %vm1373_vm10, %vm1374_vm9 }
0x1104   :  { %v1369_v34 = vmul.f32 %v1880_v3, %v1368_v58  ;;  %v1366_v35 = vsel %vm1365_vm8, %v1878_v18, %v1362_v30 }
0x1105   :  { %v1377_v29 = vmul.f32 %v1366_v35, %v1343_v6 }
0x1106   :  { %v1370_v36 = vmul.f32 0.5, %v1369_v34 }
0x1107   :  { %v1380_v24 = vmul.f32 %v1379_v43, %v1377_v29 }
0x1108   :  { %v1371_v38 = vsub.f32 1.5, %v1370_v36 }
0x1109   :  { %v1383_v37 = vadd.f32 %v1382_v33, %v1380_v24 }
0x110a   :  { %v1372_v39 = vmul.f32 %v1880_v3, %v1371_v38 }
0x110c   :  { %v1376_v40 = vsel %vm1375_vm13, %v1880_v3, %v1372_v39 }
0x110d   :  { %v1378_v41 = vmul.f32 %v1376_v40, %v1344_v57  ;;  %v1449_v57 = vperm.slane %v2276_v19, 5 }
0x110f   :  { %v1381_v42 = vmul.f32 %v1379_v43, %v1378_v41 }
0x1111   :  { %v1384_v45 = vadd.f32 %v1382_v33, %v1381_v42 }
0x1113   :  { %v1385_v13 = vpack.c.bf16 %v1384_v45, %v1383_v37 }
0x1115   :  { %1697 = vmatmul.msk.bf16.vlgmr.msrb.gmra.mxu0 %vm98_vm3, %v1385_v13  ;;  %v1537_v13 = vperm.slane %v2276_v19, 6 }
0x1192   :  { %v1416_v47 = vpop.f32.mrf.mxu0 }
0x1193   :  { %v1417_v48 = vadd.f32 %v1416_v47, %v1391_v5 }
0x1195   :  { %v1421_v51 = vmul.f32 %v1417_v48, %v1417_v48 }
0x1197   :  { %v1423_v52 = vmul.f32 %v1421_v51, %v1417_v48 }
0x1199   :  { %v1425_v53 = vmul.f32 0.044715, %v1423_v52 }
0x119a   :  { %v1418_v20 = vpop.f32.mrf.mxu0 }
0x119b   :  { %v1427_v54 = vadd.f32 %v1425_v53, %v1417_v48  ;;  %v1419_v55 = vadd.f32 %v1418_v20, %v1391_v5  ;;  %v1540_v5 = vperm.slane %v2276_v19, 7  ;;  %v1546_v19 = vld [vmem:[%s2546_s5] sm:$0x3] }
0x119d   :  { %v1429_v56 = vmul.f32 0.7978846, %v1427_v54  ;;  %v1422_v49 = vmul.f32 %v1419_v55, %v1419_v55 }
0x119f   :  { %v1424_v23 = vmul.f32 %v1422_v49, %v1419_v55  ;;  %1881 = vtanh.f32 %v1429_v56 }
0x11a1   :  { %v1426_v60 = vmul.f32 0.044715, %v1424_v23 }
0x11a3   :  { %v1428_v61 = vadd.f32 %v1426_v60, %v1419_v55 }
0x11a5   :  { %v1430_v21 = vmul.f32 0.7978846, %v1428_v61  ;;  %v1882_v62 = vpop.eup %1881 }
0x11a6   :  { %v1433_v1 = vadd.f32 1.0, %v1882_v62 }
0x11a7   :  { %1883 = vtanh.f32 %v1430_v21 }
0x11a8   :  { %v1435_v11 = vmul.f32 0.5, %v1433_v1 }
0x11aa   :  { %v1437_v9 = vmul.f32 %v1435_v11, %v1417_v48 }
0x11ad   :  { %v1884_v4 = vpop.eup %1883 }
0x11ae   :  { %v1434_v6 = vadd.f32 1.0, %v1884_v4 }
0x11b0   :  { %v1436_v27 = vmul.f32 0.5, %v1434_v6 }
0x11b2   :  { %v1438_v2 = vmul.f32 %v1436_v27, %v1419_v55 }
0x11b4   :  { %v1439_v59 = vpack.c.bf16 %v1438_v2, %v1437_v9 }
0x11b6   :  { %1722 = vmatmul.msk.bf16.vlgmr.msra.gmra.mxu3 %vm67_vm0, %v1439_v59 }
0x1239   :  { %v1486_v12 = vpop.f32.mrf.mxu3 }
0x123a   :  { %v1487_v14 = vadd.f32 %v1486_v12, %v1449_v57 }
0x123c   :  { %v1491_v10 = vadd.f32 %v1487_v14, %v1383_v37 }
0x123e   :  { %v1493_v15 = vsel %vm98_vm3, %v1491_v10, 0.0 }
0x123f   :  { %1494 = vadd.xlane.f32.xlu2 %v1493_v15 }
0x1241   :  { %v1488_v28 = vpop.f32.mrf.mxu3 }
0x1242   :  { %v1489_v32 = vadd.f32 %v1488_v28, %v1449_v57 }
0x1244   :  { %v1492_v16 = vadd.f32 %v1489_v32, %v1384_v45 }
0x1246   :  { %v1496_v17 = vsel %vm98_vm3, %v1492_v16, 0.0 }
0x1247   :  { %1497 = vadd.xlane.f32.xlu1 %v1496_v17 }
0x12b2   :  { %v1495_v8 = vpop.xlane.xlu2 %1494 }
0x12b3   :  { %v1499_v18 = vmul.f32 %v1495_v8, %v2037_v31 }
0x12b5   :  { %v1501_v22 = vsub.f32 %v1491_v10, %v1499_v18 }
0x12b7   :  { %v1503_v25 = vmul.f32 %v1501_v22, %v1501_v22 }
0x12b9   :  { %v1505_v7 = vsel %vm98_vm3, %v1503_v25, 0.0 }
0x12ba   :  { %v1498_v26 = vpop.xlane.xlu1 %1497  ;;  %1506 = vadd.xlane.f32.xlu1 %v1505_v7 }
0x12bb   :  { %v1500_v63 = vmul.f32 %v1498_v26, %v2037_v31 }
0x12bd   :  { %v1502_v3 = vsub.f32 %v1492_v16, %v1500_v63 }
0x12bf   :  { %v1504_v30 = vmul.f32 %v1502_v3, %v1502_v3 }
0x12c1   :  { %v1508_v58 = vsel %vm98_vm3, %v1504_v30, 0.0 }
0x12c2   :  { %1509 = vadd.xlane.f32.xlu0 %v1508_v58 }
0x132d   :  { %v1507_v34 = vpop.xlane.xlu1 %1506 }
0x132e   :  { %v1511_v35 = vmul.f32 %v1507_v34, %v2037_v31 }
0x1330   :  { %v1513_v36 = vadd.f32 1e-12, %v1511_v35 }
0x1332   :  { %1885 = vrsqrt.f32 %v1513_v36  ;;  %vm1521_vm14 = vweird.f32 %v1513_v36 }
0x1335   :  { %v1510_v38 = vpop.xlane.xlu0 %1509 }
0x1336   :  { %v1512_v43 = vmul.f32 %v1510_v38, %v2037_v31 }
0x1338   :  { %v1886_v29 = vpop.eup %1885  ;;  %v1514_v39 = vadd.f32 1e-12, %v1512_v43 }
0x1339   :  { %v1516_v40 = vmul.f32 %v1886_v29, %v1513_v36  ;;  %vm1522_vm0 = vweird.f32 %v1886_v29 }
0x133a   :  { %1887 = vrsqrt.f32 %v1514_v39  ;;  %vm1523_vm15 = vmor %vm1521_vm14, %vm1522_vm0  ;;  %vm1531_vm2 = vweird.f32 %v1514_v39 }
0x133b   :  { %v1517_v33 = vmul.f32 %v1886_v29, %v1516_v40 }
0x133d   :  { %v1518_v24 = vmul.f32 0.5, %v1517_v33 }
0x133f   :  { %v1519_v41 = vsub.f32 1.5, %v1518_v24 }
0x1340   :  { %v1888_v42 = vpop.eup %1887 }
0x1341   :  { %v1520_v37 = vmul.f32 %v1886_v29, %v1519_v41  ;;  %v1526_v45 = vmul.f32 %v1888_v42, %v1514_v39  ;;  %vm1532_vm1 = vweird.f32 %v1888_v42 }
0x1342   :  { %vm1533_vm4 = vmor %vm1531_vm2, %vm1532_vm1 }
0x1343   :  { %v1524_v46 = vsel %vm1523_vm15, %v1886_v29, %v1520_v37  ;;  %v1527_v0 = vmul.f32 %v1888_v42, %v1526_v45 }
0x1344   :  { %v1535_v31 = vmul.f32 %v1524_v46, %v1501_v22 }
0x1345   :  { %v1528_v44 = vmul.f32 0.5, %v1527_v0 }
0x1346   :  { %v1538_v47 = vmul.f32 %v1537_v13, %v1535_v31 }
0x1347   :  { %v1529_v48 = vsub.f32 1.5, %v1528_v44 }
0x1348   :  { %v1541_v50 = vadd.f32 %v1540_v5, %v1538_v47 }
0x1349   :  { %v1530_v51 = vmul.f32 %v1888_v42, %v1529_v48 }
0x134a   :  { %1723 = vst.msk [vmem:[%s2552_s11 + $0x20] sm:$0xff] %vm98_vm3, %v1541_v50 }
0x134b   :  { %v1534_v52 = vsel %vm1533_vm4, %v1888_v42, %v1530_v51 }
0x134c   :  { %v1536_v53 = vmul.f32 %v1534_v52, %v1502_v3 }
0x134e   :  { %v1539_v20 = vmul.f32 %v1537_v13, %v1536_v53 }
0x1350   :  { %v1542_v54 = vadd.f32 %v1540_v5, %v1539_v20 }
0x1352   :  { %1724 = vst.msk [vmem:[%s2552_s11 + $0x28] sm:$0xff] %vm98_vm3, %v1542_v54  ;;  %1564 = vmatpush.msra.mxu1 %v1542_v54 }
0x1354   :  { %1565 = vmatpush.msra.mxu1 %v1541_v50 }
0x1355   :  { %1725 = vmatmul.msk.f32.vlgmr.msra.gmra.mxu1 %vm226_vm12, %v1546_v19 }
0x13d2   :  { %v1567_v55 = vpop.f32.mrf.mxu1 }
0x13d3   :  { %1571 = vst.msk [vmem:[#allocation2] sm:$0x3] %vm1570_vm5, %v1567_v55 }
0x13d4   :  { %1584 = dma.vmem_to_hbm [thread:$0]  %s1580_s29, 32, %s1582_s21, [#allocation3]  }
0x13d5   :  { %1915 = dma.done.wait [#allocation3], 32  }
0x13d6   :  { %1916 = vsyncadd [#allocation3], 4294967264 }
0x13d7   :  { %1591 = vsyncpa [#allocation3], 1 }

</bundles_post_ra>
